<compile_context>
chip_gen: v6e
topology: v6e:2x2x1
jax: 0.10.0
libtpu: 0.0.40
codegen_flags: <defaults>
</compile_context>

<pallas_src>
import functools

import jax
import jax.numpy as jnp
from jax import lax
from jax.experimental import pallas as pl
from jax.experimental.pallas import tpu as pltpu


def gru_chunk_kernel(x_ref, wih_ref, whh_ref, bx_ref, bhn_ref,
                     out_ref, hn_ref, h_scr, *, seq_len, guard_tail):
    """One grid step == (one batch block) x (one chunk of C time steps).

    x_ref   : (BB, C, I)   raw inputs for this (batch block, time chunk)
    wih_ref : (I, 3H)      fused input weights  [W_ir | W_iz | W_in]
    whh_ref : (H, 3H)      fused hidden weights [W_hr | W_hz | W_hn]
    bx_ref  : (1, 3H)      b_ih (all gates) + b_hr + b_hz folded together
    bhn_ref : (1, H)       hidden bias of the n gate (sits inside r*(hW + b))
    out_ref : (BB, C, H)   per-step outputs, batch-first (no HBM transpose)
    hn_ref  : (1, BB, H)   final hidden state (written on last time chunk)
    h_scr   : (BB, H) f32  recurrent state carried across time chunks
    """
    c = pl.program_id(1)
    bb, chunk, _ = out_ref.shape
    in_dim = x_ref.shape[-1]
    hdim = h_scr.shape[-1]

    @pl.when(c == 0)
    def _init():
        h_scr[...] = jnp.zeros_like(h_scr)

    # Hoisted out of the inner loop (JAX does not CSE broadcast_in_dim).
    w_ih = wih_ref[...]                                               # (I, 3H)
    w_hh = whh_ref[...]                                               # (H, 3H)
    bias_x = jnp.broadcast_to(bx_ref[...], (bb, 3 * hdim)).astype(jnp.float32)
    b_hn = jnp.broadcast_to(bhn_ref[...], (bb, hdim)).astype(jnp.float32)

    t0 = c * chunk

    def step(i, h_prev):
        # Input projection: small (BB, I) x (I, 3H) dot per step; it has no
        # dependence on h_prev so it rides the otherwise-idle MXU ahead of the
        # serial chain and replaces the old (T, B, 3H) gates HBM round trip.
        x_t = x_ref[:, pl.ds(i, 1), :].reshape(bb, in_dim).astype(jnp.float32)
        gx = jnp.dot(x_t, w_ih, preferred_element_type=jnp.float32) + bias_x
        # Fused recurrent matmul: one (BB, H) x (H, 3H) MXU push per step.
        gh = jnp.dot(h_prev, w_hh, preferred_element_type=jnp.float32)
        # PyTorch GRU equations, gate order (r, z, n):
        #   r = sigmoid(xW_ir + b_ir + hW_hr + b_hr)
        #   z = sigmoid(xW_iz + b_iz + hW_hz + b_hz)
        #   n = tanh  (xW_in + b_in + r * (hW_hn + b_hn))
        #   h = (1 - z) * n + z * h_prev
        r = jax.nn.sigmoid(gx[:, :hdim] + gh[:, :hdim])
        z = jax.nn.sigmoid(gx[:, hdim:2 * hdim] + gh[:, hdim:2 * hdim])
        n = jnp.tanh(gx[:, 2 * hdim:] + r * (gh[:, 2 * hdim:] + b_hn))
        h_new = n + z * (h_prev - n)          # == (1 - z) * n + z * h_prev
        if guard_tail:
            # Padded tail steps of the last chunk: keep h, ignore garbage x.
            h_new = jnp.where(t0 + i < seq_len, h_new, h_prev)
        out_ref[:, pl.ds(i, 1), :] = h_new[:, None, :].astype(out_ref.dtype)
        return h_new

    # Bounded unroll keeps LLO scheduling visibility without vreg blow-up.
    h_last = lax.fori_loop(0, chunk, step, h_scr[...], unroll=min(chunk, 8))
    h_scr[...] = h_last

    @pl.when(c == pl.num_programs(1) - 1)
    def _finalize():
        hn_ref[...] = h_last[None].astype(hn_ref.dtype)


def _pick_chunk(seq_len, batch_block, hidden, in_dim,
                itemsize=4, vmem_budget=8 * 1024 * 1024):
    """Pick a time-chunk size.

    Constraints:
      * chunk must be a multiple of 8 (it is the second-to-last dim of the
        batch-first (BB, chunk, ...) blocks) unless it equals seq_len exactly;
      * the double-buffered x/out blocks must fit a conservative VMEM budget
        (safe even for v7x's 64 MiB physical / 32 MiB scoped default).
    """
    if seq_len <= 32:
        return seq_len
    best = None
    for c in range(64, 0, -8):
        blk_bytes = 2 * batch_block * c * (in_dim + hidden) * itemsize
        if blk_bytes > vmem_budget:
            continue
        waste = (-(-seq_len // c)) * c - seq_len     # masked tail steps
        key = (waste, -c)
        if best is None or key < best[0]:
            best = (key, c)
    return best[1] if best is not None else 8


def encoder_forward(x, params, *, chunk=None, batch_block=None):
    """Pallas equivalent of Encoder.forward (num_layers=1, unidirectional).

    x: (B, T, input_size) -> (outputs [B, T, H], hidden [1, B, H])
    """
    # TODO(synk): Dropout with p>0 in training mode not implemented; the module
    # default p=0 (and eval mode) makes it the identity, which we reproduce.
    B, T, I = x.shape
    H = params["w_hh"].shape[-1]

    w_ih, w_hh = params["w_ih"], params["w_hh"]       # (3, I, H), (3, H, H)
    b_ih, b_hh = params["b_ih"], params["b_hh"]       # (3, 1, H), (3, 1, H)

    # Fused weight layouts, gate column order [r | z | n].
    w_ih_cat = jnp.concatenate([w_ih[0], w_ih[1], w_ih[2]], axis=-1)   # (I, 3H)
    w_hh_cat = jnp.concatenate([w_hh[0], w_hh[1], w_hh[2]], axis=-1)   # (H, 3H)
    # Fold b_ih (all gates) + b_hr + b_hz into one input-side bias; b_hn must
    # stay separate (it sits inside r * (h @ W_hn + b_hn)).
    bias_x = jnp.concatenate(
        [b_ih[0] + b_hh[0], b_ih[1] + b_hh[1], b_ih[2]], axis=-1)      # (1, 3H)
    b_hn = b_hh[2]                                                      # (1, H)

    bb = B if batch_block is None else batch_block
    assert B % bb == 0, "batch_block must divide the batch size"
    assert bb == B or bb % 8 == 0, "batch_block must be B or a multiple of 8"

    if chunk is None:
        chunk = _pick_chunk(T, bb, H, I, itemsize=x.dtype.itemsize)
    assert chunk == T or chunk % 8 == 0, "chunk must be T or a multiple of 8"

    n_chunks = pl.cdiv(T, chunk)
    guard_tail = (T % chunk) != 0

    kernel = functools.partial(gru_chunk_kernel, seq_len=T,
                               guard_tail=guard_tail)

    outputs, hidden = pl.pallas_call(
        kernel,
        out_shape=(jax.ShapeDtypeStruct((B, T, H), x.dtype),
                   jax.ShapeDtypeStruct((1, B, H), x.dtype)),
        grid_spec=pltpu.PrefetchScalarGridSpec(
            num_scalar_prefetch=0,
            grid=(B // bb, n_chunks),            # (batch blocks, time chunks)
            in_specs=[
                pl.BlockSpec((bb, chunk, I), lambda b, c: (b, c, 0)),
                # Constant-index weight/bias blocks: fetched once, then the
                # pipeline sees an unchanged block index and skips re-DMA.
                pl.BlockSpec((I, 3 * H), lambda b, c: (0, 0)),
                pl.BlockSpec((H, 3 * H), lambda b, c: (0, 0)),
                pl.BlockSpec((1, 3 * H), lambda b, c: (0, 0)),
                pl.BlockSpec((1, H), lambda b, c: (0, 0)),
            ],
            out_specs=[
                # Batch-first output emitted directly: no post-kernel transpose.
                pl.BlockSpec((bb, chunk, H), lambda b, c: (b, c, 0)),
                pl.BlockSpec((1, bb, H), lambda b, c: (0, b, 0)),
            ],
            scratch_shapes=[pltpu.VMEM((bb, H), jnp.float32)],
        ),
        compiler_params=pltpu.CompilerParams(
            # Batch blocks are independent (v7x: 2 TensorCores); the time
            # recurrence is serial -> "arbitrary".
            dimension_semantics=("parallel", "arbitrary")),
    )(x, w_ih_cat, w_hh_cat, bias_x, b_hn)

    return outputs, hidden


def init_encoder_params(key, input_size, hidden_size):
    """Deterministic init matching PyTorch GRU shapes (gate order r, z, n)."""
    k = 1.0 / jnp.sqrt(hidden_size)
    keys = jax.random.split(key, 4)
    w_ih = jax.random.uniform(keys[0], (3, input_size, hidden_size),
                              jnp.float32, -k, k)
    w_hh = jax.random.uniform(keys[1], (3, hidden_size, hidden_size),
                              jnp.float32, -k, k)
    b_ih = jax.random.uniform(keys[2], (3, 1, hidden_size),
                              jnp.float32, -k, k)
    b_hh = jax.random.uniform(keys[3], (3, 1, hidden_size),
                              jnp.float32, -k, k)
    return {"w_ih": w_ih, "w_hh": w_hh, "b_ih": b_ih, "b_hh": b_hh}


def encoder_reference(x, params):
    """Pure-JAX reference (lax.scan GRU) for correctness checking."""
    B, T, I = x.shape
    H = params["w_hh"].shape[-1]
    w_ih, w_hh = params["w_ih"], params["w_hh"]
    b_ih, b_hh = params["b_ih"], params["b_hh"]

    def step(h, x_t):
        r = jax.nn.sigmoid(x_t @ w_ih[0] + b_ih[0] + h @ w_hh[0] + b_hh[0])
        z = jax.nn.sigmoid(x_t @ w_ih[1] + b_ih[1] + h @ w_hh[1] + b_hh[1])
        n = jnp.tanh(x_t @ w_ih[2] + b_ih[2] + r * (h @ w_hh[2] + b_hh[2]))
        h_new = (1.0 - z) * n + z * h
        return h_new, h_new

    h0 = jnp.zeros((B, H), jnp.float32)
    h_last, outs = lax.scan(step, h0, jnp.transpose(x, (1, 0, 2)))
    return jnp.transpose(outs, (1, 0, 2)), h_last[None]


if __name__ == "__main__":
    B, INPUT_SIZE, HIDDEN_SIZE = 2, 4, 32
    key = jax.random.PRNGKey(0)
    k_x1, k_x2, k_p = jax.random.split(key, 3)
    params = init_encoder_params(k_p, INPUT_SIZE, HIDDEN_SIZE)

    fwd = jax.jit(encoder_forward, static_argnames=("chunk", "batch_block"))

    # Case 1: T = 8, default chunk (= T, single time chunk).
    T1 = 8
    x1 = jax.random.normal(k_x1, (B, T1, INPUT_SIZE), jnp.float32)
    out1, hid1 = jax.block_until_ready(fwd(x1, params))
    ref_out1, ref_hid1 = encoder_reference(x1, params)
    assert out1.shape == (B, T1, HIDDEN_SIZE)
    assert hid1.shape == (1, B, HIDDEN_SIZE)
    assert jnp.allclose(out1, ref_out1, atol=1e-5, rtol=1e-5)
    assert jnp.allclose(hid1, ref_hid1, atol=1e-5, rtol=1e-5)

    # Case 2: T = 20, chunk = 8 -> multi-chunk carry + masked padded tail.
    T2 = 20
    x2 = jax.random.normal(k_x2, (B, T2, INPUT_SIZE), jnp.float32)
    out2, hid2 = jax.block_until_ready(fwd(x2, params, chunk=8))
    ref_out2, ref_hid2 = encoder_reference(x2, params)
    assert out2.shape == (B, T2, HIDDEN_SIZE)
    assert hid2.shape == (1, B, HIDDEN_SIZE)
    assert jnp.allclose(out2, ref_out2, atol=1e-5, rtol=1e-5)
    assert jnp.allclose(hid2, ref_hid2, atol=1e-5, rtol=1e-5)

    print("KERNEL_OK")
</pallas_src>

<mosaic_0001>
module attributes {stable_mosaic.version = 11 : i64} {
  func.func @gru_chunk_kernel(%arg0: i32, %arg1: i32, %arg2: memref<2x8x4xf32, #tpu.memory_space<vmem>>, %arg3: memref<4x96xf32, #tpu.memory_space<vmem>>, %arg4: memref<32x96xf32, #tpu.memory_space<vmem>>, %arg5: memref<1x96xf32, #tpu.memory_space<vmem>>, %arg6: memref<1x32xf32, #tpu.memory_space<vmem>>, %arg7: memref<2x8x32xf32, #tpu.memory_space<vmem>>, %arg8: memref<1x2x32xf32, #tpu.memory_space<vmem>>, %arg9: memref<2x32xf32, #tpu.memory_space<vmem>>) attributes {dimension_semantics = [#tpu.dimension_semantics<parallel>, #tpu.dimension_semantics<arbitrary>], iteration_bounds = array<i64: 1, 1>, scalar_prefetch = 0 : i64, scratch_operands = 1 : i64, tpu.core_type = #tpu.core_type<tc>, window_params = [{transform_indices = @transform_0, window_bounds = array<i64: 2, 8, 4>}, {pipeline_mode = #tpu.pipeline_mode<synchronous>, transform_indices = @transform_1, window_bounds = array<i64: 4, 96>}, {pipeline_mode = #tpu.pipeline_mode<synchronous>, transform_indices = @transform_2, window_bounds = array<i64: 32, 96>}, {pipeline_mode = #tpu.pipeline_mode<synchronous>, transform_indices = @transform_3, window_bounds = array<i64: 1, 96>}, {pipeline_mode = #tpu.pipeline_mode<synchronous>, transform_indices = @transform_4, window_bounds = array<i64: 1, 32>}, {transform_indices = @transform_5, window_bounds = array<i64: 2, 8, 32>}, {transform_indices = @transform_6, window_bounds = array<i64: 1, 2, 32>}]} {
    %c0_i32 = arith.constant 0 : i32
    %0 = arith.cmpi eq, %arg1, %c0_i32 : i32
    %1 = arith.extui %0 : i1 to i32
    %c0_i32_0 = arith.constant 0 : i32
    %2 = arith.cmpi ne, %1, %c0_i32_0 : i32
    scf.if %2 {
      %cst_78 = arith.constant 0.000000e+00 : f32
      %288 = vector.broadcast %cst_78 : f32 to vector<2x32xf32>
      %c0_79 = arith.constant 0 : index
      %c0_80 = arith.constant 0 : index
      %289 = vector.load %arg9[%c0_79, %c0_80] : memref<2x32xf32, #tpu.memory_space<vmem>>, vector<2x32xf32>
      tpu.vector_store %arg9[%c0_79, %c0_80], %288 {strides = array<i32>} : memref<2x32xf32, #tpu.memory_space<vmem>>, vector<2x32xf32>,
    } else {
    }
    %c0 = arith.constant 0 : index
    %c0_1 = arith.constant 0 : index
    %3 = vector.load %arg3[%c0, %c0_1] : memref<4x96xf32, #tpu.memory_space<vmem>>, vector<4x96xf32>
    %c0_2 = arith.constant 0 : index
    %c0_3 = arith.constant 0 : index
    %4 = vector.load %arg4[%c0_2, %c0_3] : memref<32x96xf32, #tpu.memory_space<vmem>>, vector<32x96xf32>
    %c0_4 = arith.constant 0 : index
    %c0_5 = arith.constant 0 : index
    %5 = vector.load %arg5[%c0_4, %c0_5] : memref<1x96xf32, #tpu.memory_space<vmem>>, vector<1x96xf32>
    %6 = vector.shape_cast %5 : vector<1x96xf32> to vector<1x96xf32>
    %7 = vector.broadcast %6 : vector<1x96xf32> to vector<2x96xf32>
    %c0_6 = arith.constant 0 : index
    %c0_7 = arith.constant 0 : index
    %8 = vector.load %arg6[%c0_6, %c0_7] : memref<1x32xf32, #tpu.memory_space<vmem>>, vector<1x32xf32>
    %9 = vector.shape_cast %8 : vector<1x32xf32> to vector<1x32xf32>
    %10 = vector.broadcast %9 : vector<1x32xf32> to vector<2x32xf32>
    %c0_8 = arith.constant 0 : index
    %c0_9 = arith.constant 0 : index
    %11 = vector.load %arg9[%c0_8, %c0_9] : memref<2x32xf32, #tpu.memory_space<vmem>>, vector<2x32xf32>
    %c0_i32_10 = arith.constant 0 : i32
    %c0_11 = arith.constant 0 : index
    %12 = arith.index_cast %c0_i32_10 : i32 to index
    %c0_12 = arith.constant 0 : index
    %13 = vector.load %arg2[%c0_11, %12, %c0_12] : memref<2x8x4xf32, #tpu.memory_space<vmem>>, vector<2x1x4xf32>
    %14 = vector.shape_cast %13 : vector<2x1x4xf32> to vector<2x4xf32>
    %cst = arith.constant dense<0.000000e+00> : vector<2x96xf32>
    %15 = tpu.matmul %14, %3, %cst {dimension_numbers = #tpu.dot_dimension_numbers<[1], [0], [0], [1], [0, 0, 1, 1], [], []>} : vector<2x4xf32>, vector<4x96xf32>, vector<2x96xf32> -> vector<2x96xf32>
    %16 = arith.addf %15, %7 : vector<2x96xf32>
    %cst_13 = arith.constant dense<0.000000e+00> : vector<2x96xf32>
    %17 = tpu.matmul %11, %4, %cst_13 {dimension_numbers = #tpu.dot_dimension_numbers<[1], [0], [0], [1], [0, 0, 1, 1], [], []>} : vector<2x32xf32>, vector<32x96xf32>, vector<2x96xf32> -> vector<2x96xf32>
    %18 = vector.extract_strided_slice %16 {offsets = [0, 0], sizes = [2, 32], strides = [1, 1]} : vector<2x96xf32> to vector<2x32xf32>
    %19 = vector.extract_strided_slice %17 {offsets = [0, 0], sizes = [2, 32], strides = [1, 1]} : vector<2x96xf32> to vector<2x32xf32>
    %20 = arith.addf %18, %19 : vector<2x32xf32>
    %21 = arith.negf %20 : vector<2x32xf32>
    %22 = math.exp %21 : vector<2x32xf32>
    %cst_14 = arith.constant 1.000000e+00 : f32
    %23 = vector.broadcast %cst_14 : f32 to vector<2x32xf32>
    %24 = arith.addf %23, %22 : vector<2x32xf32>
    %25 = arith.divf %23, %24 : vector<2x32xf32>
    %26 = vector.extract_strided_slice %16 {offsets = [0, 32], sizes = [2, 32], strides = [1, 1]} : vector<2x96xf32> to vector<2x32xf32>
    %27 = vector.extract_strided_slice %17 {offsets = [0, 32], sizes = [2, 32], strides = [1, 1]} : vector<2x96xf32> to vector<2x32xf32>
    %28 = arith.addf %26, %27 : vector<2x32xf32>
    %29 = arith.negf %28 : vector<2x32xf32>
    %30 = math.exp %29 : vector<2x32xf32>
    %cst_15 = arith.constant 1.000000e+00 : f32
    %31 = vector.broadcast %cst_15 : f32 to vector<2x32xf32>
    %32 = arith.addf %31, %30 : vector<2x32xf32>
    %33 = arith.divf %31, %32 : vector<2x32xf32>
    %34 = vector.extract_strided_slice %16 {offsets = [0, 64], sizes = [2, 32], strides = [1, 1]} : vector<2x96xf32> to vector<2x32xf32>
    %35 = vector.extract_strided_slice %17 {offsets = [0, 64], sizes = [2, 32], strides = [1, 1]} : vector<2x96xf32> to vector<2x32xf32>
    %36 = arith.addf %35, %10 : vector<2x32xf32>
    %37 = arith.mulf %25, %36 : vector<2x32xf32>
    %38 = arith.addf %34, %37 : vector<2x32xf32>
    %39 = math.tanh %38 : vector<2x32xf32>
    %40 = arith.subf %11, %39 : vector<2x32xf32>
    %41 = arith.mulf %33, %40 : vector<2x32xf32>
    %42 = arith.addf %39, %41 : vector<2x32xf32>
    %43 = vector.shape_cast %42 : vector<2x32xf32> to vector<2x1x32xf32>
    %c0_16 = arith.constant 0 : index
    %44 = arith.index_cast %c0_i32_10 : i32 to index
    %c0_17 = arith.constant 0 : index
    %45 = vector.load %arg7[%c0_16, %44, %c0_17] : memref<2x8x32xf32, #tpu.memory_space<vmem>>, vector<2x1x32xf32>
    tpu.vector_store %arg7[%c0_16, %44, %c0_17], %43 {strides = array<i32>} : memref<2x8x32xf32, #tpu.memory_space<vmem>>, vector<2x1x32xf32>,
    %c1_i32 = arith.constant 1 : i32
    %c0_18 = arith.constant 0 : index
    %46 = arith.index_cast %c1_i32 : i32 to index
    %c0_19 = arith.constant 0 : index
    %47 = vector.load %arg2[%c0_18, %46, %c0_19] : memref<2x8x4xf32, #tpu.memory_space<vmem>>, vector<2x1x4xf32>
    %48 = vector.shape_cast %47 : vector<2x1x4xf32> to vector<2x4xf32>
    %cst_20 = arith.constant dense<0.000000e+00> : vector<2x96xf32>
    %49 = tpu.matmul %48, %3, %cst_20 {dimension_numbers = #tpu.dot_dimension_numbers<[1], [0], [0], [1], [0, 0, 1, 1], [], []>} : vector<2x4xf32>, vector<4x96xf32>, vector<2x96xf32> -> vector<2x96xf32>
    %50 = arith.addf %49, %7 : vector<2x96xf32>
    %cst_21 = arith.constant dense<0.000000e+00> : vector<2x96xf32>
    %51 = tpu.matmul %42, %4, %cst_21 {dimension_numbers = #tpu.dot_dimension_numbers<[1], [0], [0], [1], [0, 0, 1, 1], [], []>} : vector<2x32xf32>, vector<32x96xf32>, vector<2x96xf32> -> vector<2x96xf32>
    %52 = vector.extract_strided_slice %50 {offsets = [0, 0], sizes = [2, 32], strides = [1, 1]} : vector<2x96xf32> to vector<2x32xf32>
    %53 = vector.extract_strided_slice %51 {offsets = [0, 0], sizes = [2, 32], strides = [1, 1]} : vector<2x96xf32> to vector<2x32xf32>
    %54 = arith.addf %52, %53 : vector<2x32xf32>
    %55 = arith.negf %54 : vector<2x32xf32>
    %56 = math.exp %55 : vector<2x32xf32>
    %cst_22 = arith.constant 1.000000e+00 : f32
    %57 = vector.broadcast %cst_22 : f32 to vector<2x32xf32>
    %58 = arith.addf %57, %56 : vector<2x32xf32>
    %59 = arith.divf %57, %58 : vector<2x32xf32>
    %60 = vector.extract_strided_slice %50 {offsets = [0, 32], sizes = [2, 32], strides = [1, 1]} : vector<2x96xf32> to vector<2x32xf32>
    %61 = vector.extract_strided_slice %51 {offsets = [0, 32], sizes = [2, 32], strides = [1, 1]} : vector<2x96xf32> to vector<2x32xf32>
    %62 = arith.addf %60, %61 : vector<2x32xf32>
    %63 = arith.negf %62 : vector<2x32xf32>
    %64 = math.exp %63 : vector<2x32xf32>
    %cst_23 = arith.constant 1.000000e+00 : f32
    %65 = vector.broadcast %cst_23 : f32 to vector<2x32xf32>
    %66 = arith.addf %65, %64 : vector<2x32xf32>
    %67 = arith.divf %65, %66 : vector<2x32xf32>
    %68 = vector.extract_strided_slice %50 {offsets = [0, 64], sizes = [2, 32], strides = [1, 1]} : vector<2x96xf32> to vector<2x32xf32>
    %69 = vector.extract_strided_slice %51 {offsets = [0, 64], sizes = [2, 32], strides = [1, 1]} : vector<2x96xf32> to vector<2x32xf32>
    %70 = arith.addf %69, %10 : vector<2x32xf32>
    %71 = arith.mulf %59, %70 : vector<2x32xf32>
    %72 = arith.addf %68, %71 : vector<2x32xf32>
    %73 = math.tanh %72 : vector<2x32xf32>
    %74 = arith.subf %42, %73 : vector<2x32xf32>
    %75 = arith.mulf %67, %74 : vector<2x32xf32>
    %76 = arith.addf %73, %75 : vector<2x32xf32>
    %77 = vector.shape_cast %76 : vector<2x32xf32> to vector<2x1x32xf32>
    %c0_24 = arith.constant 0 : index
    %78 = arith.index_cast %c1_i32 : i32 to index
    %c0_25 = arith.constant 0 : index
    %79 = vector.load %arg7[%c0_24, %78, %c0_25] : memref<2x8x32xf32, #tpu.memory_space<vmem>>, vector<2x1x32xf32>
    tpu.vector_store %arg7[%c0_24, %78, %c0_25], %77 {strides = array<i32>} : memref<2x8x32xf32, #tpu.memory_space<vmem>>, vector<2x1x32xf32>,
    %c2_i32 = arith.constant 2 : i32
    %c0_26 = arith.constant 0 : index
    %80 = arith.index_cast %c2_i32 : i32 to index
    %c0_27 = arith.constant 0 : index
    %81 = vector.load %arg2[%c0_26, %80, %c0_27] : memref<2x8x4xf32, #tpu.memory_space<vmem>>, vector<2x1x4xf32>
    %82 = vector.shape_cast %81 : vector<2x1x4xf32> to vector<2x4xf32>
    %cst_28 = arith.constant dense<0.000000e+00> : vector<2x96xf32>
    %83 = tpu.matmul %82, %3, %cst_28 {dimension_numbers = #tpu.dot_dimension_numbers<[1], [0], [0], [1], [0, 0, 1, 1], [], []>} : vector<2x4xf32>, vector<4x96xf32>, vector<2x96xf32> -> vector<2x96xf32>
    %84 = arith.addf %83, %7 : vector<2x96xf32>
    %cst_29 = arith.constant dense<0.000000e+00> : vector<2x96xf32>
    %85 = tpu.matmul %76, %4, %cst_29 {dimension_numbers = #tpu.dot_dimension_numbers<[1], [0], [0], [1], [0, 0, 1, 1], [], []>} : vector<2x32xf32>, vector<32x96xf32>, vector<2x96xf32> -> vector<2x96xf32>
    %86 = vector.extract_strided_slice %84 {offsets = [0, 0], sizes = [2, 32], strides = [1, 1]} : vector<2x96xf32> to vector<2x32xf32>
    %87 = vector.extract_strided_slice %85 {offsets = [0, 0], sizes = [2, 32], strides = [1, 1]} : vector<2x96xf32> to vector<2x32xf32>
    %88 = arith.addf %86, %87 : vector<2x32xf32>
    %89 = arith.negf %88 : vector<2x32xf32>
    %90 = math.exp %89 : vector<2x32xf32>
    %cst_30 = arith.constant 1.000000e+00 : f32
    %91 = vector.broadcast %cst_30 : f32 to vector<2x32xf32>
    %92 = arith.addf %91, %90 : vector<2x32xf32>
    %93 = arith.divf %91, %92 : vector<2x32xf32>
    %94 = vector.extract_strided_slice %84 {offsets = [0, 32], sizes = [2, 32], strides = [1, 1]} : vector<2x96xf32> to vector<2x32xf32>
    %95 = vector.extract_strided_slice %85 {offsets = [0, 32], sizes = [2, 32], strides = [1, 1]} : vector<2x96xf32> to vector<2x32xf32>
    %96 = arith.addf %94, %95 : vector<2x32xf32>
    %97 = arith.negf %96 : vector<2x32xf32>
    %98 = math.exp %97 : vector<2x32xf32>
    %cst_31 = arith.constant 1.000000e+00 : f32
    %99 = vector.broadcast %cst_31 : f32 to vector<2x32xf32>
    %100 = arith.addf %99, %98 : vector<2x32xf32>
    %101 = arith.divf %99, %100 : vector<2x32xf32>
    %102 = vector.extract_strided_slice %84 {offsets = [0, 64], sizes = [2, 32], strides = [1, 1]} : vector<2x96xf32> to vector<2x32xf32>
    %103 = vector.extract_strided_slice %85 {offsets = [0, 64], sizes = [2, 32], strides = [1, 1]} : vector<2x96xf32> to vector<2x32xf32>
    %104 = arith.addf %103, %10 : vector<2x32xf32>
    %105 = arith.mulf %93, %104 : vector<2x32xf32>
    %106 = arith.addf %102, %105 : vector<2x32xf32>
    %107 = math.tanh %106 : vector<2x32xf32>
    %108 = arith.subf %76, %107 : vector<2x32xf32>
    %109 = arith.mulf %101, %108 : vector<2x32xf32>
    %110 = arith.addf %107, %109 : vector<2x32xf32>
    %111 = vector.shape_cast %110 : vector<2x32xf32> to vector<2x1x32xf32>
    %c0_32 = arith.constant 0 : index
    %112 = arith.index_cast %c2_i32 : i32 to index
    %c0_33 = arith.constant 0 : index
    %113 = vector.load %arg7[%c0_32, %112, %c0_33] : memref<2x8x32xf32, #tpu.memory_space<vmem>>, vector<2x1x32xf32>
    tpu.vector_store %arg7[%c0_32, %112, %c0_33], %111 {strides = array<i32>} : memref<2x8x32xf32, #tpu.memory_space<vmem>>, vector<2x1x32xf32>,
    %c3_i32 = arith.constant 3 : i32
    %c0_34 = arith.constant 0 : index
    %114 = arith.index_cast %c3_i32 : i32 to index
    %c0_35 = arith.constant 0 : index
    %115 = vector.load %arg2[%c0_34, %114, %c0_35] : memref<2x8x4xf32, #tpu.memory_space<vmem>>, vector<2x1x4xf32>
    %116 = vector.shape_cast %115 : vector<2x1x4xf32> to vector<2x4xf32>
    %cst_36 = arith.constant dense<0.000000e+00> : vector<2x96xf32>
    %117 = tpu.matmul %116, %3, %cst_36 {dimension_numbers = #tpu.dot_dimension_numbers<[1], [0], [0], [1], [0, 0, 1, 1], [], []>} : vector<2x4xf32>, vector<4x96xf32>, vector<2x96xf32> -> vector<2x96xf32>
    %118 = arith.addf %117, %7 : vector<2x96xf32>
    %cst_37 = arith.constant dense<0.000000e+00> : vector<2x96xf32>
    %119 = tpu.matmul %110, %4, %cst_37 {dimension_numbers = #tpu.dot_dimension_numbers<[1], [0], [0], [1], [0, 0, 1, 1], [], []>} : vector<2x32xf32>, vector<32x96xf32>, vector<2x96xf32> -> vector<2x96xf32>
    %120 = vector.extract_strided_slice %118 {offsets = [0, 0], sizes = [2, 32], strides = [1, 1]} : vector<2x96xf32> to vector<2x32xf32>
    %121 = vector.extract_strided_slice %119 {offsets = [0, 0], sizes = [2, 32], strides = [1, 1]} : vector<2x96xf32> to vector<2x32xf32>
    %122 = arith.addf %120, %121 : vector<2x32xf32>
    %123 = arith.negf %122 : vector<2x32xf32>
    %124 = math.exp %123 : vector<2x32xf32>
    %cst_38 = arith.constant 1.000000e+00 : f32
    %125 = vector.broadcast %cst_38 : f32 to vector<2x32xf32>
    %126 = arith.addf %125, %124 : vector<2x32xf32>
    %127 = arith.divf %125, %126 : vector<2x32xf32>
    %128 = vector.extract_strided_slice %118 {offsets = [0, 32], sizes = [2, 32], strides = [1, 1]} : vector<2x96xf32> to vector<2x32xf32>
    %129 = vector.extract_strided_slice %119 {offsets = [0, 32], sizes = [2, 32], strides = [1, 1]} : vector<2x96xf32> to vector<2x32xf32>
    %130 = arith.addf %128, %129 : vector<2x32xf32>
    %131 = arith.negf %130 : vector<2x32xf32>
    %132 = math.exp %131 : vector<2x32xf32>
    %cst_39 = arith.constant 1.000000e+00 : f32
    %133 = vector.broadcast %cst_39 : f32 to vector<2x32xf32>
    %134 = arith.addf %133, %132 : vector<2x32xf32>
    %135 = arith.divf %133, %134 : vector<2x32xf32>
    %136 = vector.extract_strided_slice %118 {offsets = [0, 64], sizes = [2, 32], strides = [1, 1]} : vector<2x96xf32> to vector<2x32xf32>
    %137 = vector.extract_strided_slice %119 {offsets = [0, 64], sizes = [2, 32], strides = [1, 1]} : vector<2x96xf32> to vector<2x32xf32>
    %138 = arith.addf %137, %10 : vector<2x32xf32>
    %139 = arith.mulf %127, %138 : vector<2x32xf32>
    %140 = arith.addf %136, %139 : vector<2x32xf32>
    %141 = math.tanh %140 : vector<2x32xf32>
    %142 = arith.subf %110, %141 : vector<2x32xf32>
    %143 = arith.mulf %135, %142 : vector<2x32xf32>
    %144 = arith.addf %141, %143 : vector<2x32xf32>
    %145 = vector.shape_cast %144 : vector<2x32xf32> to vector<2x1x32xf32>
    %c0_40 = arith.constant 0 : index
    %146 = arith.index_cast %c3_i32 : i32 to index
    %c0_41 = arith.constant 0 : index
    %147 = vector.load %arg7[%c0_40, %146, %c0_41] : memref<2x8x32xf32, #tpu.memory_space<vmem>>, vector<2x1x32xf32>
    tpu.vector_store %arg7[%c0_40, %146, %c0_41], %145 {strides = array<i32>} : memref<2x8x32xf32, #tpu.memory_space<vmem>>, vector<2x1x32xf32>,
    %c4_i32 = arith.constant 4 : i32
    %c0_42 = arith.constant 0 : index
    %148 = arith.index_cast %c4_i32 : i32 to index
    %c0_43 = arith.constant 0 : index
    %149 = vector.load %arg2[%c0_42, %148, %c0_43] : memref<2x8x4xf32, #tpu.memory_space<vmem>>, vector<2x1x4xf32>
    %150 = vector.shape_cast %149 : vector<2x1x4xf32> to vector<2x4xf32>
    %cst_44 = arith.constant dense<0.000000e+00> : vector<2x96xf32>
    %151 = tpu.matmul %150, %3, %cst_44 {dimension_numbers = #tpu.dot_dimension_numbers<[1], [0], [0], [1], [0, 0, 1, 1], [], []>} : vector<2x4xf32>, vector<4x96xf32>, vector<2x96xf32> -> vector<2x96xf32>
    %152 = arith.addf %151, %7 : vector<2x96xf32>
    %cst_45 = arith.constant dense<0.000000e+00> : vector<2x96xf32>
    %153 = tpu.matmul %144, %4, %cst_45 {dimension_numbers = #tpu.dot_dimension_numbers<[1], [0], [0], [1], [0, 0, 1, 1], [], []>} : vector<2x32xf32>, vector<32x96xf32>, vector<2x96xf32> -> vector<2x96xf32>
    %154 = vector.extract_strided_slice %152 {offsets = [0, 0], sizes = [2, 32], strides = [1, 1]} : vector<2x96xf32> to vector<2x32xf32>
    %155 = vector.extract_strided_slice %153 {offsets = [0, 0], sizes = [2, 32], strides = [1, 1]} : vector<2x96xf32> to vector<2x32xf32>
    %156 = arith.addf %154, %155 : vector<2x32xf32>
    %157 = arith.negf %156 : vector<2x32xf32>
    %158 = math.exp %157 : vector<2x32xf32>
    %cst_46 = arith.constant 1.000000e+00 : f32
    %159 = vector.broadcast %cst_46 : f32 to vector<2x32xf32>
    %160 = arith.addf %159, %158 : vector<2x32xf32>
    %161 = arith.divf %159, %160 : vector<2x32xf32>
    %162 = vector.extract_strided_slice %152 {offsets = [0, 32], sizes = [2, 32], strides = [1, 1]} : vector<2x96xf32> to vector<2x32xf32>
    %163 = vector.extract_strided_slice %153 {offsets = [0, 32], sizes = [2, 32], strides = [1, 1]} : vector<2x96xf32> to vector<2x32xf32>
    %164 = arith.addf %162, %163 : vector<2x32xf32>
    %165 = arith.negf %164 : vector<2x32xf32>
    %166 = math.exp %165 : vector<2x32xf32>
    %cst_47 = arith.constant 1.000000e+00 : f32
    %167 = vector.broadcast %cst_47 : f32 to vector<2x32xf32>
    %168 = arith.addf %167, %166 : vector<2x32xf32>
    %169 = arith.divf %167, %168 : vector<2x32xf32>
    %170 = vector.extract_strided_slice %152 {offsets = [0, 64], sizes = [2, 32], strides = [1, 1]} : vector<2x96xf32> to vector<2x32xf32>
    %171 = vector.extract_strided_slice %153 {offsets = [0, 64], sizes = [2, 32], strides = [1, 1]} : vector<2x96xf32> to vector<2x32xf32>
    %172 = arith.addf %171, %10 : vector<2x32xf32>
    %173 = arith.mulf %161, %172 : vector<2x32xf32>
    %174 = arith.addf %170, %173 : vector<2x32xf32>
    %175 = math.tanh %174 : vector<2x32xf32>
    %176 = arith.subf %144, %175 : vector<2x32xf32>
    %177 = arith.mulf %169, %176 : vector<2x32xf32>
    %178 = arith.addf %175, %177 : vector<2x32xf32>
    %179 = vector.shape_cast %178 : vector<2x32xf32> to vector<2x1x32xf32>
    %c0_48 = arith.constant 0 : index
    %180 = arith.index_cast %c4_i32 : i32 to index
    %c0_49 = arith.constant 0 : index
    %181 = vector.load %arg7[%c0_48, %180, %c0_49] : memref<2x8x32xf32, #tpu.memory_space<vmem>>, vector<2x1x32xf32>
    tpu.vector_store %arg7[%c0_48, %180, %c0_49], %179 {strides = array<i32>} : memref<2x8x32xf32, #tpu.memory_space<vmem>>, vector<2x1x32xf32>,
    %c5_i32 = arith.constant 5 : i32
    %c0_50 = arith.constant 0 : index
    %182 = arith.index_cast %c5_i32 : i32 to index
    %c0_51 = arith.constant 0 : index
    %183 = vector.load %arg2[%c0_50, %182, %c0_51] : memref<2x8x4xf32, #tpu.memory_space<vmem>>, vector<2x1x4xf32>
    %184 = vector.shape_cast %183 : vector<2x1x4xf32> to vector<2x4xf32>
    %cst_52 = arith.constant dense<0.000000e+00> : vector<2x96xf32>
    %185 = tpu.matmul %184, %3, %cst_52 {dimension_numbers = #tpu.dot_dimension_numbers<[1], [0], [0], [1], [0, 0, 1, 1], [], []>} : vector<2x4xf32>, vector<4x96xf32>, vector<2x96xf32> -> vector<2x96xf32>
    %186 = arith.addf %185, %7 : vector<2x96xf32>
    %cst_53 = arith.constant dense<0.000000e+00> : vector<2x96xf32>
    %187 = tpu.matmul %178, %4, %cst_53 {dimension_numbers = #tpu.dot_dimension_numbers<[1], [0], [0], [1], [0, 0, 1, 1], [], []>} : vector<2x32xf32>, vector<32x96xf32>, vector<2x96xf32> -> vector<2x96xf32>
    %188 = vector.extract_strided_slice %186 {offsets = [0, 0], sizes = [2, 32], strides = [1, 1]} : vector<2x96xf32> to vector<2x32xf32>
    %189 = vector.extract_strided_slice %187 {offsets = [0, 0], sizes = [2, 32], strides = [1, 1]} : vector<2x96xf32> to vector<2x32xf32>
    %190 = arith.addf %188, %189 : vector<2x32xf32>
    %191 = arith.negf %190 : vector<2x32xf32>
    %192 = math.exp %191 : vector<2x32xf32>
    %cst_54 = arith.constant 1.000000e+00 : f32
    %193 = vector.broadcast %cst_54 : f32 to vector<2x32xf32>
    %194 = arith.addf %193, %192 : vector<2x32xf32>
    %195 = arith.divf %193, %194 : vector<2x32xf32>
    %196 = vector.extract_strided_slice %186 {offsets = [0, 32], sizes = [2, 32], strides = [1, 1]} : vector<2x96xf32> to vector<2x32xf32>
    %197 = vector.extract_strided_slice %187 {offsets = [0, 32], sizes = [2, 32], strides = [1, 1]} : vector<2x96xf32> to vector<2x32xf32>
    %198 = arith.addf %196, %197 : vector<2x32xf32>
    %199 = arith.negf %198 : vector<2x32xf32>
    %200 = math.exp %199 : vector<2x32xf32>
    %cst_55 = arith.constant 1.000000e+00 : f32
    %201 = vector.broadcast %cst_55 : f32 to vector<2x32xf32>
    %202 = arith.addf %201, %200 : vector<2x32xf32>
    %203 = arith.divf %201, %202 : vector<2x32xf32>
    %204 = vector.extract_strided_slice %186 {offsets = [0, 64], sizes = [2, 32], strides = [1, 1]} : vector<2x96xf32> to vector<2x32xf32>
    %205 = vector.extract_strided_slice %187 {offsets = [0, 64], sizes = [2, 32], strides = [1, 1]} : vector<2x96xf32> to vector<2x32xf32>
    %206 = arith.addf %205, %10 : vector<2x32xf32>
    %207 = arith.mulf %195, %206 : vector<2x32xf32>
    %208 = arith.addf %204, %207 : vector<2x32xf32>
    %209 = math.tanh %208 : vector<2x32xf32>
    %210 = arith.subf %178, %209 : vector<2x32xf32>
    %211 = arith.mulf %203, %210 : vector<2x32xf32>
    %212 = arith.addf %209, %211 : vector<2x32xf32>
    %213 = vector.shape_cast %212 : vector<2x32xf32> to vector<2x1x32xf32>
    %c0_56 = arith.constant 0 : index
    %214 = arith.index_cast %c5_i32 : i32 to index
    %c0_57 = arith.constant 0 : index
    %215 = vector.load %arg7[%c0_56, %214, %c0_57] : memref<2x8x32xf32, #tpu.memory_space<vmem>>, vector<2x1x32xf32>
    tpu.vector_store %arg7[%c0_56, %214, %c0_57], %213 {strides = array<i32>} : memref<2x8x32xf32, #tpu.memory_space<vmem>>, vector<2x1x32xf32>,
    %c6_i32 = arith.constant 6 : i32
    %c0_58 = arith.constant 0 : index
    %216 = arith.index_cast %c6_i32 : i32 to index
    %c0_59 = arith.constant 0 : index
    %217 = vector.load %arg2[%c0_58, %216, %c0_59] : memref<2x8x4xf32, #tpu.memory_space<vmem>>, vector<2x1x4xf32>
    %218 = vector.shape_cast %217 : vector<2x1x4xf32> to vector<2x4xf32>
    %cst_60 = arith.constant dense<0.000000e+00> : vector<2x96xf32>
    %219 = tpu.matmul %218, %3, %cst_60 {dimension_numbers = #tpu.dot_dimension_numbers<[1], [0], [0], [1], [0, 0, 1, 1], [], []>} : vector<2x4xf32>, vector<4x96xf32>, vector<2x96xf32> -> vector<2x96xf32>
    %220 = arith.addf %219, %7 : vector<2x96xf32>
    %cst_61 = arith.constant dense<0.000000e+00> : vector<2x96xf32>
    %221 = tpu.matmul %212, %4, %cst_61 {dimension_numbers = #tpu.dot_dimension_numbers<[1], [0], [0], [1], [0, 0, 1, 1], [], []>} : vector<2x32xf32>, vector<32x96xf32>, vector<2x96xf32> -> vector<2x96xf32>
    %222 = vector.extract_strided_slice %220 {offsets = [0, 0], sizes = [2, 32], strides = [1, 1]} : vector<2x96xf32> to vector<2x32xf32>
    %223 = vector.extract_strided_slice %221 {offsets = [0, 0], sizes = [2, 32], strides = [1, 1]} : vector<2x96xf32> to vector<2x32xf32>
    %224 = arith.addf %222, %223 : vector<2x32xf32>
    %225 = arith.negf %224 : vector<2x32xf32>
    %226 = math.exp %225 : vector<2x32xf32>
    %cst_62 = arith.constant 1.000000e+00 : f32
    %227 = vector.broadcast %cst_62 : f32 to vector<2x32xf32>
    %228 = arith.addf %227, %226 : vector<2x32xf32>
    %229 = arith.divf %227, %228 : vector<2x32xf32>
    %230 = vector.extract_strided_slice %220 {offsets = [0, 32], sizes = [2, 32], strides = [1, 1]} : vector<2x96xf32> to vector<2x32xf32>
    %231 = vector.extract_strided_slice %221 {offsets = [0, 32], sizes = [2, 32], strides = [1, 1]} : vector<2x96xf32> to vector<2x32xf32>
    %232 = arith.addf %230, %231 : vector<2x32xf32>
    %233 = arith.negf %232 : vector<2x32xf32>
    %234 = math.exp %233 : vector<2x32xf32>
    %cst_63 = arith.constant 1.000000e+00 : f32
    %235 = vector.broadcast %cst_63 : f32 to vector<2x32xf32>
    %236 = arith.addf %235, %234 : vector<2x32xf32>
    %237 = arith.divf %235, %236 : vector<2x32xf32>
    %238 = vector.extract_strided_slice %220 {offsets = [0, 64], sizes = [2, 32], strides = [1, 1]} : vector<2x96xf32> to vector<2x32xf32>
    %239 = vector.extract_strided_slice %221 {offsets = [0, 64], sizes = [2, 32], strides = [1, 1]} : vector<2x96xf32> to vector<2x32xf32>
    %240 = arith.addf %239, %10 : vector<2x32xf32>
    %241 = arith.mulf %229, %240 : vector<2x32xf32>
    %242 = arith.addf %238, %241 : vector<2x32xf32>
    %243 = math.tanh %242 : vector<2x32xf32>
    %244 = arith.subf %212, %243 : vector<2x32xf32>
    %245 = arith.mulf %237, %244 : vector<2x32xf32>
    %246 = arith.addf %243, %245 : vector<2x32xf32>
    %247 = vector.shape_cast %246 : vector<2x32xf32> to vector<2x1x32xf32>
    %c0_64 = arith.constant 0 : index
    %248 = arith.index_cast %c6_i32 : i32 to index
    %c0_65 = arith.constant 0 : index
    %249 = vector.load %arg7[%c0_64, %248, %c0_65] : memref<2x8x32xf32, #tpu.memory_space<vmem>>, vector<2x1x32xf32>
    tpu.vector_store %arg7[%c0_64, %248, %c0_65], %247 {strides = array<i32>} : memref<2x8x32xf32, #tpu.memory_space<vmem>>, vector<2x1x32xf32>,
    %c7_i32 = arith.constant 7 : i32
    %c0_66 = arith.constant 0 : index
    %250 = arith.index_cast %c7_i32 : i32 to index
    %c0_67 = arith.constant 0 : index
    %251 = vector.load %arg2[%c0_66, %250, %c0_67] : memref<2x8x4xf32, #tpu.memory_space<vmem>>, vector<2x1x4xf32>
    %252 = vector.shape_cast %251 : vector<2x1x4xf32> to vector<2x4xf32>
    %cst_68 = arith.constant dense<0.000000e+00> : vector<2x96xf32>
    %253 = tpu.matmul %252, %3, %cst_68 {dimension_numbers = #tpu.dot_dimension_numbers<[1], [0], [0], [1], [0, 0, 1, 1], [], []>} : vector<2x4xf32>, vector<4x96xf32>, vector<2x96xf32> -> vector<2x96xf32>
    %254 = arith.addf %253, %7 : vector<2x96xf32>
    %cst_69 = arith.constant dense<0.000000e+00> : vector<2x96xf32>
    %255 = tpu.matmul %246, %4, %cst_69 {dimension_numbers = #tpu.dot_dimension_numbers<[1], [0], [0], [1], [0, 0, 1, 1], [], []>} : vector<2x32xf32>, vector<32x96xf32>, vector<2x96xf32> -> vector<2x96xf32>
    %256 = vector.extract_strided_slice %254 {offsets = [0, 0], sizes = [2, 32], strides = [1, 1]} : vector<2x96xf32> to vector<2x32xf32>
    %257 = vector.extract_strided_slice %255 {offsets = [0, 0], sizes = [2, 32], strides = [1, 1]} : vector<2x96xf32> to vector<2x32xf32>
    %258 = arith.addf %256, %257 : vector<2x32xf32>
    %259 = arith.negf %258 : vector<2x32xf32>
    %260 = math.exp %259 : vector<2x32xf32>
    %cst_70 = arith.constant 1.000000e+00 : f32
    %261 = vector.broadcast %cst_70 : f32 to vector<2x32xf32>
    %262 = arith.addf %261, %260 : vector<2x32xf32>
    %263 = arith.divf %261, %262 : vector<2x32xf32>
    %264 = vector.extract_strided_slice %254 {offsets = [0, 32], sizes = [2, 32], strides = [1, 1]} : vector<2x96xf32> to vector<2x32xf32>
    %265 = vector.extract_strided_slice %255 {offsets = [0, 32], sizes = [2, 32], strides = [1, 1]} : vector<2x96xf32> to vector<2x32xf32>
    %266 = arith.addf %264, %265 : vector<2x32xf32>
    %267 = arith.negf %266 : vector<2x32xf32>
    %268 = math.exp %267 : vector<2x32xf32>
    %cst_71 = arith.constant 1.000000e+00 : f32
    %269 = vector.broadcast %cst_71 : f32 to vector<2x32xf32>
    %270 = arith.addf %269, %268 : vector<2x32xf32>
    %271 = arith.divf %269, %270 : vector<2x32xf32>
    %272 = vector.extract_strided_slice %254 {offsets = [0, 64], sizes = [2, 32], strides = [1, 1]} : vector<2x96xf32> to vector<2x32xf32>
    %273 = vector.extract_strided_slice %255 {offsets = [0, 64], sizes = [2, 32], strides = [1, 1]} : vector<2x96xf32> to vector<2x32xf32>
    %274 = arith.addf %273, %10 : vector<2x32xf32>
    %275 = arith.mulf %263, %274 : vector<2x32xf32>
    %276 = arith.addf %272, %275 : vector<2x32xf32>
    %277 = math.tanh %276 : vector<2x32xf32>
    %278 = arith.subf %246, %277 : vector<2x32xf32>
    %279 = arith.mulf %271, %278 : vector<2x32xf32>
    %280 = arith.addf %277, %279 : vector<2x32xf32>
    %281 = vector.shape_cast %280 : vector<2x32xf32> to vector<2x1x32xf32>
    %c0_72 = arith.constant 0 : index
    %282 = arith.index_cast %c7_i32 : i32 to index
    %c0_73 = arith.constant 0 : index
    %283 = vector.load %arg7[%c0_72, %282, %c0_73] : memref<2x8x32xf32, #tpu.memory_space<vmem>>, vector<2x1x32xf32>
    tpu.vector_store %arg7[%c0_72, %282, %c0_73], %281 {strides = array<i32>} : memref<2x8x32xf32, #tpu.memory_space<vmem>>, vector<2x1x32xf32>,
    %c8_i32 = arith.constant 8 : i32
    %c0_74 = arith.constant 0 : index
    %c0_75 = arith.constant 0 : index
    %284 = vector.load %arg9[%c0_74, %c0_75] : memref<2x32xf32, #tpu.memory_space<vmem>>, vector<2x32xf32>
    tpu.vector_store %arg9[%c0_74, %c0_75], %280 {strides = array<i32>} : memref<2x32xf32, #tpu.memory_space<vmem>>, vector<2x32xf32>,
    %c0_i32_76 = arith.constant 0 : i32
    %285 = arith.cmpi eq, %arg1, %c0_i32_76 : i32
    %286 = arith.extui %285 : i1 to i32
    %c0_i32_77 = arith.constant 0 : i32
    %287 = arith.cmpi ne, %286, %c0_i32_77 : i32
    scf.if %287 {
      %288 = vector.shape_cast %280 : vector<2x32xf32> to vector<1x2x32xf32>
      %c0_78 = arith.constant 0 : index
      %c0_79 = arith.constant 0 : index
      %c0_80 = arith.constant 0 : index
      %289 = vector.load %arg8[%c0_78, %c0_79, %c0_80] : memref<1x2x32xf32, #tpu.memory_space<vmem>>, vector<1x2x32xf32>
      tpu.vector_store %arg8[%c0_78, %c0_79, %c0_80], %288 {strides = array<i32>} : memref<1x2x32xf32, #tpu.memory_space<vmem>>, vector<1x2x32xf32>,
    } else {
    }
    return
  }
  func.func @transform_0(%arg0: i32, %arg1: i32) -> (i32, i32, i32) {
    %c0_i32 = arith.constant 0 : i32
    %c0_i32_0 = arith.constant 0 : i32
    return %arg0, %arg1, %c0_i32 : i32, i32, i32
  }
  func.func @transform_1(%arg0: i32, %arg1: i32) -> (i32, i32) {
    %c0_i32 = arith.constant 0 : i32
    %c0_i32_0 = arith.constant 0 : i32
    %c0_i32_1 = arith.constant 0 : i32
    return %c0_i32, %c0_i32_0 : i32, i32
  }
  func.func @transform_2(%arg0: i32, %arg1: i32) -> (i32, i32) {
    %c0_i32 = arith.constant 0 : i32
    %c0_i32_0 = arith.constant 0 : i32
    %c0_i32_1 = arith.constant 0 : i32
    return %c0_i32, %c0_i32_0 : i32, i32
  }
  func.func @transform_3(%arg0: i32, %arg1: i32) -> (i32, i32) {
    %c0_i32 = arith.constant 0 : i32
    %c0_i32_0 = arith.constant 0 : i32
    %c0_i32_1 = arith.constant 0 : i32
    return %c0_i32, %c0_i32_0 : i32, i32
  }
  func.func @transform_4(%arg0: i32, %arg1: i32) -> (i32, i32) {
    %c0_i32 = arith.constant 0 : i32
    %c0_i32_0 = arith.constant 0 : i32
    %c0_i32_1 = arith.constant 0 : i32
    return %c0_i32, %c0_i32_0 : i32, i32
  }
  func.func @transform_5(%arg0: i32, %arg1: i32) -> (i32, i32, i32) {
    %c0_i32 = arith.constant 0 : i32
    %c0_i32_0 = arith.constant 0 : i32
    return %arg0, %arg1, %c0_i32 : i32, i32, i32
  }
  func.func @transform_6(%arg0: i32, %arg1: i32) -> (i32, i32, i32) {
    %c0_i32 = arith.constant 0 : i32
    %c0_i32_0 = arith.constant 0 : i32
    %c0_i32_1 = arith.constant 0 : i32
    return %c0_i32, %arg0, %c0_i32_0 : i32, i32, i32
  }
}

</mosaic_0001>

<bundles_post_ra>
// kernel: encoder_forward.1
= control target key start
LH: loop header
LB: loop body
LE: loop exit
PB: predicated region body
PF: predicated region fallthrough
CT: control target
= control target key end

     0   :  { %12 = vsyncpa [#allocation4], 0  ;;  %vm59_vm0 = vcmask 1043456   ;;  %v2190_v1 = vmov 0.0   ;;  %vm2191_vm1 = vmmov 0   ;;  %vm54_vm2 = vcmask 1041409   ;;  %s2640_s0 = inlined_call_operand.vmem [shape: f32[2,8,4], index: 0, kind: input, shape index: {}]   ;;  %s2641_s1 = inlined_call_operand.vmem [shape: f32[4,96], index: 1, kind: input, shape index: {}]   ;;  %s2642_s2 = inlined_call_operand.vmem [shape: f32[32,96], index: 2, kind: input, shape index: {}]   ;;  %s2643_s3 = inlined_call_operand.vmem [shape: f32[1,96], index: 3, kind: input, shape index: {}]   ;;  %s2644_s4 = inlined_call_operand.vmem [shape: f32[1,32], index: 4, kind: input, shape index: {}]   ;;  %s2645_s5 = inlined_call_operand.hbm [shape: f32[2,8,32], index: 5, kind: output, shape index: {0}]   ;;  %s2646_s6 = inlined_call_operand.hbm [shape: f32[1,2,32], index: 6, kind: output, shape index: {1}]  }
   0x1   :  { %v2238_v0 = vld [vmem:[%s2641_s1] sm:$0xf]  ;;  %1960 = vmatprep.subr.mxu1 %v2190_v1  ;;  %1962 = vmatprep.mubr.msk.f32.mxu1 %vm2191_vm1, %v2190_v1  ;;  %v50_v3 = vld [vmem:[%s2640_s0 + $0x8] sm:$0x1]  ;;  %vm56_vm3 = vcmask 31744   ;;  %vm28_vm4 = vcmask 254976  }
   0x2   :  { %v49_v2 = vld [vmem:[%s2640_s0] sm:$0x1]  ;;  %1961 = vmatpush3.msk.msra.mxu1 %vm59_vm0, %v2238_v0  ;;  %v53_v4 = vrot.slane %v50_v3, 7  ;;  %1976 = vmatprep.subr.mxu0 %v2190_v1  ;;  %v2256_v5 = vld [vmem:[%s2642_s2 + $0x18] sm:$0xff]  ;;  %29 = vst.msk [vmem:[#allocation2] sm:$0x3] %vm28_vm4, %v2190_v1 }
   0x3   :  { %1965 = vmatprep.subr.mxu1 %v2190_v1  ;;  %v1871_v6 = vld [vmem:[%s2644_s4] ss:$0 sm:$0xff]  ;;  %1977 = vmatpush3.msk.msra.mxu0 %vm59_vm0, %v2238_v0  ;;  %s2192_s30 = smov 64  }
   0x4   :  { %v55_v7 = vsel %vm54_vm2, %v53_v4, %v49_v2  ;;  %214 = vrot.lane.b32.xlu0 %v1871_v6, %s2192_s30  ;;  %1978 = vmatprep.mubr.msk.f32.mxu0 %vm2191_vm1, %v2190_v1 }
   0x5   :  { %13 = vsyncpa [#allocation6], 0  ;;  %1963 = vmatmul.mubr.msk.f32.vlgmr.msra.gmra.mxu1 %vm56_vm3, %v55_v7  ;;  %v2273_v8 = vld [vmem:[%s2642_s2 + $0x10] sm:$0xff]  ;;  %1981 = vmatprep.subr.mxu0 %v2190_v1  ;;  %v2283_v9 = vld [vmem:[%s2642_s2 + $0x8] sm:$0xff]  ;;  %vm133_vm5 = vcmask 261120   ;;  %s2194_s17 = smov 96  }
   0x6   :  { %1966 = vmatpush3.msra.mxu1 %v2256_v5  ;;  %1973 = vmatprep.mubr.msk.f32.mxu1 %vm2191_vm1, %v2190_v1  ;;  %v2290_v10 = vld [vmem:[%s2642_s2] sm:$0xff]  ;;  %v285_v33 = vld [vmem:[%s2640_s0 + $0x9] sm:$0x1]  ;;  %v506_v59 = vld [vmem:[%s2640_s0 + $0xa] sm:$0x1]  ;;  %vm281_vm6 = vcmask 253952  }
   0x7   :  { %1967 = vmatprep.subr.mxu1 %v2190_v1  ;;  %v2309_v18 = vld [vmem:[%s2643_s3] ss:$0 sm:$0xff]  ;;  %s2193_s3 = smov 32   ;;  %v284_v32 = vld [vmem:[%s2640_s0 + $0x1] sm:$0x1]  ;;  %v288_v34 = vrot.slane %v285_v33, 7 }
   0x8   :  { %1968 = vmatpush3.msra.mxu1 %v2273_v8  ;;  %v505_v58 = vld [vmem:[%s2640_s0 + $0x2] sm:$0x1]  ;;  %v509_v60 = vrot.slane %v506_v59, 7  ;;  %s2197_s16 = smov [#allocation5]  }
   0x9   :  { %1969 = vmatprep.subr.mxu1 %v2190_v1  ;;  %v48_v11 = vld [vmem:[#allocation2] sm:$0x3]  ;;  %v289_v35 = vsel %vm54_vm2, %v288_v34, %v284_v32 }
   0xa   :  { %1970 = vmatpush3.msra.mxu1 %v2283_v9  ;;  %1979 = vmatmul.mubr.msk.f32.vlgmr.msra.gmra.mxu0 %vm56_vm3, %v289_v35  ;;  %v510_v61 = vsel %vm54_vm2, %v509_v60, %v505_v58 }
   0xb   :  { %1971 = vmatprep.subr.mxu1 %v2190_v1  ;;  %1982 = vmatpush3.msra.mxu0 %v2256_v5 }
   0xc   :  { %1972 = vmatpush3.msra.mxu1 %v2290_v10  ;;  %1989 = vmatprep.mubr.msk.f32.mxu0 %vm2191_vm1, %v2190_v1 }
   0xd   :  { %1974 = vmatmul.mubr.msk.f32.vlgmr.msra.gmra.mxu1 %vm133_vm5, %v48_v11  ;;  %1992 = vmatprep.subr.mxu1 %v2190_v1 }
   0xe   :  { %1993 = vmatpush3.msk.msra.mxu1 %vm59_vm0, %v2238_v0  ;;  %1994 = vmatprep.mubr.msk.f32.mxu1 %vm2191_vm1, %v2190_v1 }
   0xf   :  { %1997 = vmatprep.subr.mxu1 %v2190_v1  ;;  %1983 = vmatprep.subr.mxu0 %v2190_v1 }
  0x10   :  { %1984 = vmatpush3.msra.mxu0 %v2273_v8 }
  0x11   :  { %1985 = vmatprep.subr.mxu0 %v2190_v1  ;;  %1995 = vmatmul.mubr.msk.f32.vlgmr.msra.gmra.mxu1 %vm56_vm3, %v510_v61 }
  0x12   :  { %1986 = vmatpush3.msra.mxu0 %v2283_v9  ;;  %1998 = vmatpush3.msra.mxu1 %v2256_v5 }
  0x13   :  { %1987 = vmatprep.subr.mxu0 %v2190_v1  ;;  %2005 = vmatprep.mubr.msk.f32.mxu1 %vm2191_vm1, %v2190_v1 }
  0x14   :  { %1988 = vmatpush3.msra.mxu0 %v2290_v10  ;;  %1999 = vmatprep.subr.mxu1 %v2190_v1 }
  0x15   :  { %2008 = vmatprep.subr.mxu0 %v2190_v1  ;;  %2000 = vmatpush3.msra.mxu1 %v2273_v8 }
  0x16   :  { %2001 = vmatprep.subr.mxu1 %v2190_v1 }
  0x17   :  { %2002 = vmatpush3.msra.mxu1 %v2283_v9 }
  0x18   :  { %2003 = vmatprep.subr.mxu1 %v2190_v1 }
  0x19   :  { %2004 = vmatpush3.msra.mxu1 %v2290_v10 }
  0x1a   :  { %2024 = vmatprep.subr.mxu1 %v2190_v1 }
  0x76   :  { %v2302_v14 = vpop.permute.xlu0 %214 }
  0xc5   :  { %v129_v12 = vpop.f32.mrf.mxu1 }
  0xc6   :  { %v130_v19 = vadd.f32 %v2309_v18, %v129_v12 }
  0xc7   :  { %v1964_v13 = vpop.f32.mrf.mxu1 }
  0xca   :  { %v358_v40 = vpop.f32.mrf.mxu0 }
  0xcb   :  { %v359_v46 = vadd.f32 %v2309_v18, %v358_v40 }
  0xcc   :  { %v1980_v41 = vpop.f32.mrf.mxu0 }
  0xcd   :  { %v203_v15 = vpop.f32.mrf.mxu1 }
  0xce   :  { %v217_v16 = vadd.f32 %v2302_v14, %v203_v15  ;;  %v207_v20 = vadd.f32 %v203_v15, %v130_v19 }
  0xcf   :  { %v1975_v17 = vpop.f32.mrf.mxu1 }
  0xd0   :  { %219 = vrot.lane.b32.xlu0 %v217_v16, %s2192_s30  ;;  %v1875_v21 = vmul.f32 -1.442695, %v207_v20 }
  0xd1   :  { %v579_v4 = vpop.f32.mrf.mxu1 }
  0xd2   :  { %2098 = vpow2.f32 %v1875_v21  ;;  %v580_v15 = vadd.f32 %v2309_v18, %v579_v4 }
  0xd3   :  { %v1996_v6 = vpop.f32.mrf.mxu1 }
  0xdf   :  { %v2099_v22 = vpop.eup %2098 }
  0xe0   :  { %v211_v23 = vadd.f32 1.0, %v2099_v22 }
  0xe2   :  { %2100 = vrcp.f32 %v211_v23 }
  0xef   :  { %v2101_v24 = vpop.eup %2100 }
 0x142   :  { %v220_v25 = vpop.permute.xlu0 %219 }
 0x143   :  { %v222_v26 = vmul.f32 %v2101_v24, %v220_v25 }
 0x145   :  { %224 = vrot.lane.b32.xlu1 %v222_v26, %s2192_s30 }
 0x1b7   :  { %v225_v27 = vpop.permute.xlu1 %224 }
 0x1b8   :  { %v227_v28 = vadd.f32 %v225_v27, %v130_v19 }
 0x1ba   :  { %2102 = vtanh.f32 %v227_v28  ;;  %v726_v28 = vld [vmem:[%s2640_s0 + $0x3] sm:$0x1] }
 0x1c7   :  { %v2103_v29 = vpop.eup %2102 }
 0x1c8   :  { %230 = vrot.lane.b32.xlu1 %v2103_v29, %s2192_s30 }
 0x23a   :  { %v231_v30 = vpop.permute.xlu1 %230 }
 0x23b   :  { %v233_v31 = vsub.f32 %v48_v11, %v231_v30 }
 0x23d   :  { %235 = vrot.lane.b32.xlu0 %v233_v31, %s2193_s3 }
 0x2af   :  { %v236_v36 = vpop.permute.xlu0 %235 }
 0x2b0   :  { %v238_v37 = vmul.f32 %v2101_v24, %v236_v36 }
 0x2b2   :  { %240 = vrot.lane.b32.xlu1 %v238_v37, %s2193_s3 }
 0x324   :  { %v241_v38 = vpop.permute.xlu1 %240 }
 0x325   :  { %v2334_v39 = vadd.f32 %v2103_v29, %v241_v38  ;;  %v727_v29 = vld [vmem:[%s2640_s0 + $0xb] sm:$0x1] }
 0x326   :  { %v730_v30 = vrot.slane %v727_v29, 7 }
 0x327   :  { %362 = vrot.lane.b32.xlu0 %v2334_v39, %s2192_s30 }
 0x328   :  { %v731_v31 = vsel %vm54_vm2, %v730_v30, %v726_v28 }
 0x399   :  { %v363_v42 = vpop.permute.xlu0 %362 }
 0x39a   :  { %1990 = vmatmul.mubr.msk.f32.vlgmr.msra.gmra.mxu0 %vm133_vm5, %v363_v42 }
 0x39b   :  { %2009 = vmatpush3.msk.msra.mxu0 %vm59_vm0, %v2238_v0  ;;  %2010 = vmatprep.mubr.msk.f32.mxu0 %vm2191_vm1, %v2190_v1 }
 0x39c   :  { %2013 = vmatprep.subr.mxu0 %v2190_v1 }
 0x39e   :  { %2011 = vmatmul.mubr.msk.f32.vlgmr.msra.gmra.mxu0 %vm56_vm3, %v731_v31 }
 0x39f   :  { %2014 = vmatpush3.msra.mxu0 %v2256_v5  ;;  %2021 = vmatprep.mubr.msk.f32.mxu0 %vm2191_vm1, %v2190_v1 }
 0x3a0   :  { %2015 = vmatprep.subr.mxu0 %v2190_v1 }
 0x3a1   :  { %2016 = vmatpush3.msra.mxu0 %v2273_v8 }
 0x3a2   :  { %2017 = vmatprep.subr.mxu0 %v2190_v1 }
 0x3a3   :  { %2018 = vmatpush3.msra.mxu0 %v2283_v9 }
 0x3a4   :  { %2019 = vmatprep.subr.mxu0 %v2190_v1 }
 0x3a5   :  { %2020 = vmatpush3.msra.mxu0 %v2290_v10 }
 0x3a6   :  { %2040 = vmatprep.subr.mxu0 %v2190_v1 }
 0x45a   :  { %v432_v43 = vpop.f32.mrf.mxu0 }
 0x45b   :  { %v443_v44 = vadd.f32 %v432_v43, %v2302_v14  ;;  %v436_v47 = vadd.f32 %v432_v43, %v359_v46 }
 0x45c   :  { %v1991_v45 = vpop.f32.mrf.mxu0 }
 0x45d   :  { %445 = vrot.lane.b32.xlu1 %v443_v44, %s2192_s30  ;;  %v1879_v48 = vmul.f32 -1.442695, %v436_v47 }
 0x45e   :  { %v800_v36 = vpop.f32.mrf.mxu0 }
 0x45f   :  { %2104 = vpow2.f32 %v1879_v48  ;;  %v801_v43 = vadd.f32 %v2309_v18, %v800_v36 }
 0x460   :  { %v2012_v37 = vpop.f32.mrf.mxu0 }
 0x46c   :  { %v2105_v49 = vpop.eup %2104 }
 0x46d   :  { %v440_v50 = vadd.f32 1.0, %v2105_v49 }
 0x46f   :  { %2106 = vrcp.f32 %v440_v50 }
 0x47c   :  { %v2107_v51 = vpop.eup %2106 }
 0x4cf   :  { %v446_v52 = vpop.permute.xlu1 %445 }
 0x4d0   :  { %v448_v53 = vmul.f32 %v2107_v51, %v446_v52 }
 0x4d2   :  { %450 = vrot.lane.b32.xlu0 %v448_v53, %s2192_s30 }
 0x544   :  { %v451_v54 = vpop.permute.xlu0 %450 }
 0x545   :  { %v453_v55 = vadd.f32 %v451_v54, %v359_v46 }
 0x547   :  { %2108 = vtanh.f32 %v453_v55  ;;  %v947_v55 = vld [vmem:[%s2640_s0 + $0x4] sm:$0x1] }
 0x554   :  { %v2109_v56 = vpop.eup %2108 }
 0x555   :  { %v455_v57 = vsub.f32 %v2334_v39, %v2109_v56 }
 0x557   :  { %457 = vrot.lane.b32.xlu1 %v455_v57, %s2194_s17 }
 0x5c9   :  { %v458_v62 = vpop.permute.xlu1 %457 }
 0x5ca   :  { %v460_v63 = vmul.f32 %v2107_v51, %v458_v62 }
 0x5cc   :  { %462 = vrot.lane.b32.xlu0 %v460_v63, %s2193_s3 }
 0x63e   :  { %v463_v2 = vpop.permute.xlu0 %462 }
 0x63f   :  { %v2369_v3 = vadd.f32 %v2109_v56, %v463_v2  ;;  %v948_v56 = vld [vmem:[%s2640_s0 + $0xc] sm:$0x1] }
 0x640   :  { %v951_v57 = vrot.slane %v948_v56, 7 }
 0x641   :  { %583 = vrot.lane.b32.xlu1 %v2369_v3, %s2192_s30 }
 0x642   :  { %v952_v58 = vsel %vm54_vm2, %v951_v57, %v947_v55 }
 0x6b3   :  { %v584_v7 = vpop.permute.xlu1 %583 }
 0x6b4   :  { %2006 = vmatmul.mubr.msk.f32.vlgmr.msra.gmra.mxu1 %vm133_vm5, %v584_v7 }
 0x6b5   :  { %2025 = vmatpush3.msk.msra.mxu1 %vm59_vm0, %v2238_v0  ;;  %2026 = vmatprep.mubr.msk.f32.mxu1 %vm2191_vm1, %v2190_v1 }
 0x6b6   :  { %2029 = vmatprep.subr.mxu1 %v2190_v1 }
 0x6b8   :  { %2027 = vmatmul.mubr.msk.f32.vlgmr.msra.gmra.mxu1 %vm56_vm3, %v952_v58 }
 0x6b9   :  { %2030 = vmatpush3.msra.mxu1 %v2256_v5  ;;  %2037 = vmatprep.mubr.msk.f32.mxu1 %vm2191_vm1, %v2190_v1 }
 0x6ba   :  { %2031 = vmatprep.subr.mxu1 %v2190_v1 }
 0x6bb   :  { %2032 = vmatpush3.msra.mxu1 %v2273_v8 }
 0x6bc   :  { %2033 = vmatprep.subr.mxu1 %v2190_v1 }
 0x6bd   :  { %2034 = vmatpush3.msra.mxu1 %v2283_v9 }
 0x6be   :  { %2035 = vmatprep.subr.mxu1 %v2190_v1 }
 0x6bf   :  { %2036 = vmatpush3.msra.mxu1 %v2290_v10 }
 0x6c0   :  { %2056 = vmatprep.subr.mxu1 %v2190_v1 }
 0x774   :  { %v653_v11 = vpop.f32.mrf.mxu1 }
 0x775   :  { %v664_v12 = vadd.f32 %v653_v11, %v2302_v14  ;;  %v657_v16 = vadd.f32 %v653_v11, %v580_v15 }
 0x776   :  { %v2007_v13 = vpop.f32.mrf.mxu1 }
 0x777   :  { %666 = vrot.lane.b32.xlu0 %v664_v12, %s2192_s30  ;;  %v1883_v17 = vmul.f32 -1.442695, %v657_v16 }
 0x778   :  { %v1021_v63 = vpop.f32.mrf.mxu1 }
 0x779   :  { %2110 = vpow2.f32 %v1883_v17  ;;  %v1022_v12 = vadd.f32 %v2309_v18, %v1021_v63 }
 0x77a   :  { %v2028_v2 = vpop.f32.mrf.mxu1 }
 0x786   :  { %v2111_v19 = vpop.eup %2110 }
 0x787   :  { %v661_v20 = vadd.f32 1.0, %v2111_v19 }
 0x789   :  { %2112 = vrcp.f32 %v661_v20 }
 0x796   :  { %v2113_v21 = vpop.eup %2112 }
 0x7e9   :  { %v667_v22 = vpop.permute.xlu0 %666 }
 0x7ea   :  { %v669_v23 = vmul.f32 %v2113_v21, %v667_v22 }
 0x7ec   :  { %671 = vrot.lane.b32.xlu1 %v669_v23, %s2192_s30 }
 0x85e   :  { %v672_v24 = vpop.permute.xlu1 %671 }
 0x85f   :  { %v674_v25 = vadd.f32 %v672_v24, %v580_v15 }
 0x861   :  { %2114 = vtanh.f32 %v674_v25 }
 0x86e   :  { %v2115_v26 = vpop.eup %2114 }
 0x86f   :  { %v676_v27 = vsub.f32 %v2369_v3, %v2115_v26 }
 0x871   :  { %678 = vrot.lane.b32.xlu0 %v676_v27, %s2194_s17  ;;  %v1169_v27 = vld [vmem:[%s2640_s0 + $0xd] sm:$0x1] }
 0x872   :  { %v1172_v28 = vrot.slane %v1169_v27, 7 }
 0x8e3   :  { %v679_v32 = vpop.permute.xlu0 %678 }
 0x8e4   :  { %v681_v33 = vmul.f32 %v2113_v21, %v679_v32 }
 0x8e6   :  { %683 = vrot.lane.b32.xlu1 %v681_v33, %s2193_s3 }
 0x958   :  { %v684_v34 = vpop.permute.xlu1 %683 }
 0x959   :  { %v2404_v35 = vadd.f32 %v2115_v26, %v684_v34  ;;  %v1168_v26 = vld [vmem:[%s2640_s0 + $0x5] sm:$0x1] }
 0x95a   :  { %v1173_v29 = vsel %vm54_vm2, %v1172_v28, %v1168_v26  ;;  %v1611_v26 = vld [vmem:[%s2640_s0 + $0xf] sm:$0x1] }
 0x95b   :  { %804 = vrot.lane.b32.xlu0 %v2404_v35, %s2192_s30  ;;  %v1614_v27 = vrot.slane %v1611_v26, 7 }
 0x9cd   :  { %v805_v38 = vpop.permute.xlu0 %804 }
 0x9ce   :  { %2022 = vmatmul.mubr.msk.f32.vlgmr.msra.gmra.mxu0 %vm133_vm5, %v805_v38 }
 0x9cf   :  { %2041 = vmatpush3.msk.msra.mxu0 %vm59_vm0, %v2238_v0  ;;  %2042 = vmatprep.mubr.msk.f32.mxu0 %vm2191_vm1, %v2190_v1 }
 0x9d0   :  { %2045 = vmatprep.subr.mxu0 %v2190_v1 }
 0x9d2   :  { %2043 = vmatmul.mubr.msk.f32.vlgmr.msra.gmra.mxu0 %vm56_vm3, %v1173_v29 }
 0x9d3   :  { %2046 = vmatpush3.msra.mxu0 %v2256_v5  ;;  %2053 = vmatprep.mubr.msk.f32.mxu0 %vm2191_vm1, %v2190_v1 }
 0x9d4   :  { %2047 = vmatprep.subr.mxu0 %v2190_v1 }
 0x9d5   :  { %2048 = vmatpush3.msra.mxu0 %v2273_v8 }
 0x9d6   :  { %2049 = vmatprep.subr.mxu0 %v2190_v1 }
 0x9d7   :  { %2050 = vmatpush3.msra.mxu0 %v2283_v9 }
 0x9d8   :  { %2051 = vmatprep.subr.mxu0 %v2190_v1 }
 0x9d9   :  { %2052 = vmatpush3.msra.mxu0 %v2290_v10 }
 0x9da   :  { %2072 = vmatprep.subr.mxu0 %v2190_v1 }
 0xa8e   :  { %v874_v40 = vpop.f32.mrf.mxu0 }
 0xa8f   :  { %v885_v41 = vadd.f32 %v874_v40, %v2302_v14  ;;  %v878_v44 = vadd.f32 %v874_v40, %v801_v43 }
 0xa90   :  { %v2023_v42 = vpop.f32.mrf.mxu0 }
 0xa91   :  { %887 = vrot.lane.b32.xlu1 %v885_v41, %s2192_s30  ;;  %v1887_v45 = vmul.f32 -1.442695, %v878_v44 }
 0xa92   :  { %v1242_v34 = vpop.f32.mrf.mxu0 }
 0xa93   :  { %2116 = vpow2.f32 %v1887_v45  ;;  %v1243_v42 = vadd.f32 %v2309_v18, %v1242_v34 }
 0xa94   :  { %v2044_v36 = vpop.f32.mrf.mxu0 }
 0xaa0   :  { %v2117_v46 = vpop.eup %2116 }
 0xaa1   :  { %v882_v47 = vadd.f32 1.0, %v2117_v46 }
 0xaa3   :  { %2118 = vrcp.f32 %v882_v47 }
 0xab0   :  { %v2119_v48 = vpop.eup %2118 }
 0xb03   :  { %v888_v49 = vpop.permute.xlu1 %887 }
 0xb04   :  { %v890_v50 = vmul.f32 %v2119_v48, %v888_v49 }
 0xb06   :  { %892 = vrot.lane.b32.xlu0 %v890_v50, %s2192_s30 }
 0xb78   :  { %v893_v51 = vpop.permute.xlu0 %892 }
 0xb79   :  { %v895_v52 = vadd.f32 %v893_v51, %v801_v43 }
 0xb7b   :  { %2120 = vtanh.f32 %v895_v52 }
 0xb88   :  { %v2121_v53 = vpop.eup %2120 }
 0xb89   :  { %v897_v54 = vsub.f32 %v2404_v35, %v2121_v53 }
 0xb8b   :  { %899 = vrot.lane.b32.xlu1 %v897_v54, %s2194_s17  ;;  %v1390_v54 = vld [vmem:[%s2640_s0 + $0xe] sm:$0x1] }
 0xb8c   :  { %v1393_v55 = vrot.slane %v1390_v54, 7 }
 0xbfd   :  { %v900_v59 = vpop.permute.xlu1 %899 }
 0xbfe   :  { %v902_v60 = vmul.f32 %v2119_v48, %v900_v59 }
 0xc00   :  { %904 = vrot.lane.b32.xlu0 %v902_v60, %s2193_s3 }
 0xc72   :  { %v905_v61 = vpop.permute.xlu0 %904 }
 0xc73   :  { %v2439_v62 = vadd.f32 %v2121_v53, %v905_v61  ;;  %v1389_v53 = vld [vmem:[%s2640_s0 + $0x6] sm:$0x1] }
 0xc74   :  { %v1394_v56 = vsel %vm54_vm2, %v1393_v55, %v1389_v53 }
 0xc75   :  { %1025 = vrot.lane.b32.xlu1 %v2439_v62, %s2192_s30 }
 0xce7   :  { %v1026_v4 = vpop.permute.xlu1 %1025 }
 0xce8   :  { %2038 = vmatmul.mubr.msk.f32.vlgmr.msra.gmra.mxu1 %vm133_vm5, %v1026_v4 }
 0xce9   :  { %2057 = vmatpush3.msk.msra.mxu1 %vm59_vm0, %v2238_v0  ;;  %2058 = vmatprep.mubr.msk.f32.mxu1 %vm2191_vm1, %v2190_v1 }
 0xcea   :  { %2061 = vmatprep.subr.mxu1 %v2190_v1 }
 0xcec   :  { %2059 = vmatmul.mubr.msk.f32.vlgmr.msra.gmra.mxu1 %vm56_vm3, %v1394_v56 }
 0xced   :  { %2062 = vmatpush3.msra.mxu1 %v2256_v5  ;;  %2069 = vmatprep.mubr.msk.f32.mxu1 %vm2191_vm1, %v2190_v1 }
 0xcee   :  { %2063 = vmatprep.subr.mxu1 %v2190_v1 }
 0xcef   :  { %2064 = vmatpush3.msra.mxu1 %v2273_v8 }
 0xcf0   :  { %2065 = vmatprep.subr.mxu1 %v2190_v1 }
 0xcf1   :  { %2066 = vmatpush3.msra.mxu1 %v2283_v9 }
 0xcf2   :  { %2067 = vmatprep.subr.mxu1 %v2190_v1 }
 0xcf3   :  { %2068 = vmatpush3.msra.mxu1 %v2290_v10 }
 0xda8   :  { %v1095_v6 = vpop.f32.mrf.mxu1 }
 0xda9   :  { %v1106_v7 = vadd.f32 %v1095_v6, %v2302_v14  ;;  %v1099_v13 = vadd.f32 %v1095_v6, %v1022_v12 }
 0xdaa   :  { %v2039_v11 = vpop.f32.mrf.mxu1 }
 0xdab   :  { %1108 = vrot.lane.b32.xlu0 %v1106_v7, %s2192_s30  ;;  %v1891_v15 = vmul.f32 -1.442695, %v1099_v13 }
 0xdac   :  { %v1463_v61 = vpop.f32.mrf.mxu1 }
 0xdad   :  { %2122 = vpow2.f32 %v1891_v15  ;;  %v1464_v11 = vadd.f32 %v2309_v18, %v1463_v61 }
 0xdae   :  { %v2060_v63 = vpop.f32.mrf.mxu1 }
 0xdba   :  { %v2123_v16 = vpop.eup %2122 }
 0xdbb   :  { %v1103_v17 = vadd.f32 1.0, %v2123_v16 }
 0xdbd   :  { %2124 = vrcp.f32 %v1103_v17 }
 0xdca   :  { %v2125_v19 = vpop.eup %2124 }
 0xe1d   :  { %v1109_v20 = vpop.permute.xlu0 %1108 }
 0xe1e   :  { %v1111_v21 = vmul.f32 %v2125_v19, %v1109_v20 }
 0xe20   :  { %1113 = vrot.lane.b32.xlu1 %v1111_v21, %s2192_s30 }
 0xe92   :  { %v1114_v22 = vpop.permute.xlu1 %1113 }
 0xe93   :  { %v1116_v23 = vadd.f32 %v1114_v22, %v1022_v12 }
 0xe95   :  { %2126 = vtanh.f32 %v1116_v23 }
 0xea2   :  { %v2127_v24 = vpop.eup %2126 }
 0xea3   :  { %v1118_v25 = vsub.f32 %v2439_v62, %v2127_v24 }
 0xea5   :  { %1120 = vrot.lane.b32.xlu0 %v1118_v25, %s2194_s17  ;;  %v1610_v25 = vld [vmem:[%s2640_s0 + $0x7] sm:$0x1]  ;;  %s2196_s0 = smov [#allocation3]  }
 0xea6   :  { %v1615_v28 = vsel %vm54_vm2, %v1614_v27, %v1610_v25 }
 0xf17   :  { %v1121_v30 = vpop.permute.xlu0 %1120 }
 0xf18   :  { %v1123_v31 = vmul.f32 %v2125_v19, %v1121_v30 }
 0xf1a   :  { %1125 = vrot.lane.b32.xlu1 %v1123_v31, %s2193_s3 }
 0xf8c   :  { %v1126_v32 = vpop.permute.xlu1 %1125 }
 0xf8d   :  { %v2474_v33 = vadd.f32 %v2127_v24, %v1126_v32 }
 0xf8f   :  { %1246 = vrot.lane.b32.xlu0 %v2474_v33, %s2192_s30 }
0x1001   :  { %v1247_v37 = vpop.permute.xlu0 %1246 }
0x1002   :  { %2054 = vmatmul.mubr.msk.f32.vlgmr.msra.gmra.mxu0 %vm133_vm5, %v1247_v37 }
0x1003   :  { %2073 = vmatpush3.msk.msra.mxu0 %vm59_vm0, %v2238_v0  ;;  %2074 = vmatprep.mubr.msk.f32.mxu0 %vm2191_vm1, %v2190_v1 }
0x1004   :  { %2077 = vmatprep.subr.mxu0 %v2190_v1 }
0x1006   :  { %2075 = vmatmul.mubr.msk.f32.vlgmr.msra.gmra.mxu0 %vm56_vm3, %v1615_v28 }
0x1007   :  { %2078 = vmatpush3.msra.mxu0 %v2256_v5  ;;  %2085 = vmatprep.mubr.msk.f32.mxu0 %vm2191_vm1, %v2190_v1 }
0x1008   :  { %2079 = vmatprep.subr.mxu0 %v2190_v1 }
0x1009   :  { %2080 = vmatpush3.msra.mxu0 %v2273_v8 }
0x100a   :  { %2081 = vmatprep.subr.mxu0 %v2190_v1 }
0x100b   :  { %2082 = vmatpush3.msra.mxu0 %v2283_v9 }
0x100c   :  { %2083 = vmatprep.subr.mxu0 %v2190_v1 }
0x100d   :  { %2084 = vmatpush3.msra.mxu0 %v2290_v10 }
0x10c2   :  { %v1316_v38 = vpop.f32.mrf.mxu0 }
0x10c3   :  { %v1327_v40 = vadd.f32 %v1316_v38, %v2302_v14  ;;  %v1320_v43 = vadd.f32 %v1316_v38, %v1243_v42 }
0x10c4   :  { %v2055_v41 = vpop.f32.mrf.mxu0 }
0x10c5   :  { %1329 = vrot.lane.b32.xlu1 %v1327_v40, %s2192_s30  ;;  %v1895_v44 = vmul.f32 -1.442695, %v1320_v43 }
0x10c6   :  { %v1684_v32 = vpop.f32.mrf.mxu0 }
0x10c7   :  { %2128 = vpow2.f32 %v1895_v44  ;;  %v1685_v9 = vadd.f32 %v2309_v18, %v1684_v32 }
0x10c8   :  { %v2076_v34 = vpop.f32.mrf.mxu0 }
0x10d4   :  { %v2129_v45 = vpop.eup %2128 }
0x10d5   :  { %v1324_v46 = vadd.f32 1.0, %v2129_v45 }
0x10d7   :  { %2130 = vrcp.f32 %v1324_v46  ;;  %v2195_v46 = vmov 1966171168  }
0x10e4   :  { %v2131_v0 = vpop.eup %2130 }
0x1137   :  { %v1330_v47 = vpop.permute.xlu1 %1329 }
0x1138   :  { %v1332_v48 = vmul.f32 %v2131_v0, %v1330_v47 }
0x113a   :  { %1334 = vrot.lane.b32.xlu0 %v1332_v48, %s2192_s30 }
0x11ac   :  { %v1335_v49 = vpop.permute.xlu0 %1334 }
0x11ad   :  { %v1337_v50 = vadd.f32 %v1335_v49, %v1243_v42 }
0x11af   :  { %2132 = vtanh.f32 %v1337_v50 }
0x11bc   :  { %v2133_v51 = vpop.eup %2132 }
0x11bd   :  { %v1339_v52 = vsub.f32 %v2474_v33, %v2133_v51 }
0x11bf   :  { %1341 = vrot.lane.b32.xlu1 %v1339_v52, %s2194_s17 }
0x1231   :  { %v1342_v57 = vpop.permute.xlu1 %1341 }
0x1232   :  { %v1344_v58 = vmul.f32 %v2131_v0, %v1342_v57  ;;  %v246_v0 = vunpack.c.l.s4 %v2195_v46 }
0x1234   :  { %1346 = vrot.lane.b32.xlu0 %v1344_v58, %s2193_s3  ;;  %v247_v48 = vunpack.c.0.s8 %v246_v0 }
0x12a6   :  { %v1347_v59 = vpop.permute.xlu0 %1346 }
0x12a7   :  { %v2508_v60 = vadd.f32 %v2133_v51, %v1347_v59 }
0x12a9   :  { %1467 = vrot.lane.b32.xlu1 %v2508_v60, %s2192_s30 }
0x131b   :  { %v1468_v2 = vpop.permute.xlu1 %1467 }
0x131c   :  { %2070 = vmatmul.mubr.msk.f32.vlgmr.msra.gmra.mxu1 %vm133_vm5, %v1468_v2 }
0x13dc   :  { %v1537_v4 = vpop.f32.mrf.mxu1 }
0x13dd   :  { %v1548_v6 = vadd.f32 %v1537_v4, %v2302_v14  ;;  %v1541_v12 = vadd.f32 %v1537_v4, %v1464_v11 }
0x13de   :  { %v2071_v7 = vpop.f32.mrf.mxu1 }
0x13df   :  { %1550 = vrot.lane.b32.xlu0 %v1548_v6, %s2192_s30  ;;  %v1899_v13 = vmul.f32 -1.442695, %v1541_v12 }
0x13e1   :  { %2134 = vpow2.f32 %v1899_v13 }
0x13ee   :  { %v2135_v15 = vpop.eup %2134 }
0x13ef   :  { %v1545_v16 = vadd.f32 1.0, %v2135_v15 }
0x13f1   :  { %2136 = vrcp.f32 %v1545_v16 }
0x13fe   :  { %v2137_v17 = vpop.eup %2136 }
0x1451   :  { %v1551_v19 = vpop.permute.xlu0 %1550 }
0x1452   :  { %v1553_v20 = vmul.f32 %v2137_v17, %v1551_v19 }
0x1454   :  { %1555 = vrot.lane.b32.xlu1 %v1553_v20, %s2192_s30 }
0x14c6   :  { %v1556_v21 = vpop.permute.xlu1 %1555 }
0x14c7   :  { %v1558_v22 = vadd.f32 %v1556_v21, %v1464_v11 }
0x14c9   :  { %2138 = vtanh.f32 %v1558_v22 }
0x14d6   :  { %v2139_v23 = vpop.eup %2138 }
0x14d7   :  { %v1560_v24 = vsub.f32 %v2508_v60, %v2139_v23 }
0x14d9   :  { %1562 = vrot.lane.b32.xlu0 %v1560_v24, %s2194_s17 }
0x154b   :  { %v1563_v29 = vpop.permute.xlu0 %1562 }
0x154c   :  { %v1565_v30 = vmul.f32 %v2137_v17, %v1563_v29 }
0x154e   :  { %1567 = vrot.lane.b32.xlu1 %v1565_v30, %s2193_s3 }
0x15c0   :  { %v1568_v5 = vpop.permute.xlu1 %1567 }
0x15c1   :  { %v1570_v31 = vadd.f32 %v2139_v23, %v1568_v5 }
0x15c3   :  { %1688 = vrot.lane.b32.xlu0 %v1570_v31, %s2192_s30 }
0x1635   :  { %v1689_v36 = vpop.permute.xlu0 %1688 }
0x1636   :  { %2086 = vmatmul.mubr.msk.f32.vlgmr.msra.gmra.mxu0 %vm133_vm5, %v1689_v36 }
0x16f6   :  { %v1758_v8 = vpop.f32.mrf.mxu0 }
0x16f7   :  { %v1769_v37 = vadd.f32 %v1758_v8, %v2302_v14  ;;  %v1762_v1 = vadd.f32 %v1758_v8, %v1685_v9  ;;  %v248_v14 = vlaneseq }
0x16f8   :  { %v2087_v38 = vpop.f32.mrf.mxu0 }
0x16f9   :  { %1771 = vrot.lane.b32.xlu1 %v1769_v37, %s2192_s30  ;;  %v1903_v40 = vmul.f32 -1.442695, %v1762_v1  ;;  %v249_v49 = vshrl.u32 %v248_v14, 7 }
0x16fb   :  { %2140 = vpow2.f32 %v1903_v40  ;;  %v2543_v18 = vsub.s32 %v247_v48, %v249_v49  ;;  %v2553_v55 = vsub.s32 0, %v249_v49 }
0x16fd   :  { %v251_v50 = vrot.slane %v2334_v39, %v2543_v18  ;;  %v473_v52 = vrot.slane %v2369_v3, %v2543_v18  ;;  %v694_v56 = vrot.slane %v2404_v35, %v2543_v18  ;;  %v915_v3 = vrot.slane %v2439_v62, %v2543_v18 }
0x16fe   :  { %v1136_v61 = vrot.slane %v2474_v33, %v2543_v18  ;;  %v1357_v2 = vrot.slane %v2508_v60, %v2543_v18  ;;  %v1578_v6 = vrot.slane %v1570_v31, %v2543_v18 }
0x16ff   :  { %v259_v54 = vrot.slane %v251_v50, %v2543_v18  ;;  %v481_v39 = vrot.slane %v473_v52, %v2543_v18  ;;  %v702_v59 = vrot.slane %v694_v56, %v2543_v18  ;;  %v923_v63 = vrot.slane %v915_v3, %v2543_v18 }
0x1700   :  { %v1144_v4 = vrot.slane %v1136_v61, %v2543_v18  ;;  %v1365_v33 = vrot.slane %v1357_v2, %v2543_v18  ;;  %v1586_v12 = vrot.slane %v1578_v6, %v2543_v18  ;;  %v252_v13 = vcombine.high %v251_v50, %v251_v50 }
0x1701   :  { %v270_v57 = vrot.slane %v259_v54, %v2553_v55  ;;  %v492_v58 = vrot.slane %v481_v39, %v2553_v55  ;;  %v713_v35 = vrot.slane %v702_v59, %v2553_v55  ;;  %v934_v62 = vrot.slane %v923_v63, %v2553_v55 }
0x1702   :  { %v1155_v7 = vrot.slane %v1144_v4, %v2553_v55  ;;  %v1376_v11 = vrot.slane %v1365_v33, %v2553_v55  ;;  %v1597_v60 = vrot.slane %v1586_v12, %v2553_v55  ;;  %v474_v16 = vcombine.high %v473_v52, %v473_v52 }
0x1703   :  { %v266_v19 = vrot.slane %v252_v13, %v2543_v18  ;;  %v695_v21 = vcombine.high %v694_v56, %v694_v56  ;;  %v916_v25 = vcombine.high %v915_v3, %v915_v3  ;;  %v1137_v29 = vcombine.high %v1136_v61, %v1136_v61 }
0x1704   :  { %v488_v23 = vrot.slane %v474_v16, %v2543_v18  ;;  %v1358_v32 = vcombine.high %v1357_v2, %v1357_v2  ;;  %v1579_v37 = vcombine.high %v1578_v6, %v1578_v6 }
0x1705   :  { %v274_v22 = vrot.slane %v266_v19, %v2553_v55  ;;  %v709_v27 = vrot.slane %v695_v21, %v2543_v18  ;;  %v930_v5 = vrot.slane %v916_v25, %v2543_v18  ;;  %v1151_v36 = vrot.slane %v1137_v29, %v2543_v18 }
0x1706   :  { %v496_v26 = vrot.slane %v488_v23, %v2553_v55 }
0x1707   :  { %v717_v30 = vrot.slane %v709_v27, %v2553_v55  ;;  %v938_v34 = vrot.slane %v930_v5, %v2553_v55  ;;  %v1159_v38 = vrot.slane %v1151_v36, %v2553_v55 }
0x1708   :  { %v2141_v10 = vpop.eup %2140 }
0x1709   :  { %v1766_v41 = vadd.f32 1.0, %v2141_v10  ;;  %v1593_v10 = vrot.slane %v1579_v37, %v2543_v18 }
0x170b   :  { %2142 = vrcp.f32 %v1766_v41 }
0x1718   :  { %v2143_v42 = vpop.eup %2142 }
0x176b   :  { %v1772_v43 = vpop.permute.xlu1 %1771 }
0x176c   :  { %v1774_v44 = vmul.f32 %v2143_v42, %v1772_v43 }
0x176e   :  { %1776 = vrot.lane.b32.xlu0 %v1774_v44, %s2192_s30 }
0x17e0   :  { %v1777_v45 = vpop.permute.xlu0 %1776 }
0x17e1   :  { %v1779_v47 = vadd.f32 %v1777_v45, %v1685_v9  ;;  %v1372_v9 = vrot.slane %v1358_v32, %v2543_v18 }
0x17e3   :  { %2144 = vtanh.f32 %v1779_v47  ;;  %v1380_v40 = vrot.slane %v1372_v9, %v2553_v55 }
0x17f0   :  { %v2547_v51 = vpop.eup %2144 }
0x17f1   :  { %v1781_v53 = vsub.f32 %v1570_v31, %v2547_v51 }
0x17f3   :  { %1783 = vrot.lane.b32.xlu1 %v1781_v53, %s2194_s17  ;;  %s1858_s17 = sshll.u32 %s2197_s16, 4  ;;  %s1859_s17 = int_to_ptr.vmem [resolvable:$true] %s1858_s17 }
0x17f7   :  { %275 = vrot.lane.b32.xlu1 %v270_v57, %s2192_s30 }
0x17fb   :  { %497 = vrot.lane.b32.xlu1 %v492_v58, %s2192_s30 }
0x17ff   :  { %718 = vrot.lane.b32.xlu1 %v713_v35, %s2192_s30 }
0x1803   :  { %939 = vrot.lane.b32.xlu1 %v934_v62, %s2192_s30 }
0x1807   :  { %1160 = vrot.lane.b32.xlu1 %v1155_v7, %s2192_s30 }
0x180b   :  { %1381 = vrot.lane.b32.xlu1 %v1376_v11, %s2192_s30 }
0x180f   :  { %1602 = vrot.lane.b32.xlu1 %v1597_v60, %s2192_s30 }
0x1865   :  { %v1784_v15 = vpop.permute.xlu1 %1783 }
0x1866   :  { %v1786_v17 = vmul.f32 %v2143_v42, %v1784_v15  ;;  %v1601_v42 = vrot.slane %v1593_v10, %v2553_v55 }
0x1868   :  { %1788 = vrot.lane.b32.xlu0 %v1786_v17, %s2193_s3  ;;  %s1845_s3 = sshll.u32 %s2196_s0, 4  ;;  %s1846_s3 = int_to_ptr.vmem [resolvable:$true] %s1845_s3 }
0x1869   :  { %v276_v20 = vpop.permute.xlu1 %275  ;;  %p2151_p1 = scmp.lt.s32.totalorder %s1846_s3, %s1846_s3 }
0x186a   :  { %282 = vst.msk [vmem:[#allocation3] sm:$0x1] %vm281_vm6, %v276_v20 }
0x186c   :  { %277 = vrot.lane.b32.xlu0 %v274_v22, %s2192_s30 }
0x186d   :  { %v498_v24 = vpop.permute.xlu1 %497 }
0x186e   :  { %503 = vst.msk [vmem:[#allocation3 + $0x1] sm:$0x1] %vm281_vm6, %v498_v24 }
0x1870   :  { %499 = vrot.lane.b32.xlu0 %v496_v26, %s2192_s30 }
0x1871   :  { %v719_v28 = vpop.permute.xlu1 %718 }
0x1872   :  { %724 = vst.msk [vmem:[#allocation3 + $0x2] sm:$0x1] %vm281_vm6, %v719_v28 }
0x1874   :  { %720 = vrot.lane.b32.xlu0 %v717_v30, %s2192_s30 }
0x1875   :  { %v940_v31 = vpop.permute.xlu1 %939 }
0x1876   :  { %945 = vst.msk [vmem:[#allocation3 + $0x3] sm:$0x1] %vm281_vm6, %v940_v31 }
0x1878   :  { %941 = vrot.lane.b32.xlu0 %v938_v34, %s2192_s30 }
0x1879   :  { %v1161_v8 = vpop.permute.xlu1 %1160 }
0x187a   :  { %1166 = vst.msk [vmem:[#allocation3 + $0x4] sm:$0x1] %vm281_vm6, %v1161_v8 }
0x187c   :  { %1162 = vrot.lane.b32.xlu0 %v1159_v38, %s2192_s30 }
0x187d   :  { %v1382_v1 = vpop.permute.xlu1 %1381 }
0x187e   :  { %1387 = vst.msk [vmem:[#allocation3 + $0x5] sm:$0x1] %vm281_vm6, %v1382_v1 }
0x1880   :  { %1383 = vrot.lane.b32.xlu0 %v1380_v40, %s2192_s30 }
0x1881   :  { %v1603_v41 = vpop.permute.xlu1 %1602 }
0x1882   :  { %1608 = vst.msk [vmem:[#allocation3 + $0x6] sm:$0x1] %vm281_vm6, %v1603_v41 }
0x1884   :  { %1604 = vrot.lane.b32.xlu0 %v1601_v42, %s2192_s30 }
0x18da   :  { %v1789_v43 = vpop.permute.xlu0 %1788 }
0x18db   :  { %v1791_v44 = vadd.f32 %v2547_v51, %v1789_v43 }
0x18dd   :  { %v1799_v45 = vrot.slane %v1791_v44, %v2543_v18 }
0x18de   :  { %v278_v46 = vpop.permute.xlu0 %277 }
0x18df   :  { %v1800_v0 = vcombine.high %v1799_v45, %v1799_v45  ;;  %v1807_v14 = vrot.slane %v1799_v45, %v2543_v18  ;;  %283 = vst.msk [vmem:[#allocation3 + $0x8] sm:$0x1] %vm281_vm6, %v278_v46 }
0x18e1   :  { %v1818_v47 = vrot.slane %v1807_v14, %v2553_v55  ;;  %v1814_v48 = vrot.slane %v1800_v0, %v2543_v18 }
0x18e2   :  { %v500_v49 = vpop.permute.xlu0 %499 }
0x18e3   :  { %504 = vst.msk [vmem:[#allocation3 + $0x9] sm:$0x1] %vm281_vm6, %v500_v49  ;;  %1823 = vrot.lane.b32.xlu1 %v1818_v47, %s2192_s30  ;;  %v1822_v50 = vrot.slane %v1814_v48, %v2553_v55 }
0x18e5   :  { %1825 = vrot.lane.b32.xlu0 %v1822_v50, %s2192_s30 }
0x18e6   :  { %v721_v51 = vpop.permute.xlu0 %720 }
0x18e7   :  { %725 = vst.msk [vmem:[#allocation3 + $0xa] sm:$0x1] %vm281_vm6, %v721_v51  ;;  %1831 = vrot.lane.b32.xlu1 %v1791_v44, %s2192_s30  ;;  %s2146_s30 = scalar_lea.vmem %s1846_s3, 256 }
0x18e8   :  { %p2147_p0 = scmp.ne.s32.totalorder %s1846_s3, %s2146_s30  ;;  %p2152_p2 = scmp.lt.s32.totalorder %s2146_s30, %s2146_s30 }
0x18ea   :  { %v942_v52 = vpop.permute.xlu0 %941  ;;  %p2153_p3 = por %p2152_p2, %p2151_p1 }
0x18eb   :  { %946 = vst.msk [vmem:[#allocation3 + $0xb] sm:$0x1] %vm281_vm6, %v942_v52 }
0x18ec   :  { %p2154_p4 = pnand %p2153_p3, %p2147_p0 }
0x18ee   :  { %v1163_v53 = vpop.permute.xlu0 %1162 }
0x18ef   :  { %1167 = vst.msk [vmem:[#allocation3 + $0xc] sm:$0x1] %vm281_vm6, %v1163_v53 }
0x18f2   :  { %v1384_v18 = vpop.permute.xlu0 %1383 }
0x18f3   :  { %1388 = vst.msk [vmem:[#allocation3 + $0xd] sm:$0x1] %vm281_vm6, %v1384_v18 }
0x18f6   :  { %v1605_v54 = vpop.permute.xlu0 %1604 }
0x18f7   :  { %1609 = vst.msk [vmem:[#allocation3 + $0xe] sm:$0x1] %vm281_vm6, %v1605_v54 }
0x1955   :  { %v1824_v55 = vpop.permute.xlu1 %1823 }
0x1956   :  { %1829 = vst.msk [vmem:[#allocation3 + $0x7] sm:$0x1] %vm281_vm6, %v1824_v55 }
0x1957   :  { %v1826_v56 = vpop.permute.xlu0 %1825 }
0x1958   :  { %1830 = vst.msk [vmem:[#allocation3 + $0xf] sm:$0x1] %vm281_vm6, %v1826_v56 }
0x1959   :  { %v1832_v57 = vpop.permute.xlu1 %1831 }
0x195a   :  { %2157 = shalt.err (!%p2154_p4)
}
0x195b   :  { %s2198_s18 = smov 128   ;;  %s2199_s19 = smov 8   ;;  %1835 = vst.msk [vmem:[#allocation2] sm:$0x3] %vm28_vm4, %v1832_v57  ;;  %1839 = vst.msk [vmem:[#allocation5] sm:$0x3] %vm28_vm4, %v1832_v57 }
0x195c   :  { %1851 = dma.vmem_to_hbm [thread:$0]  %s1846_s3, 256, %s2645_s5, [#allocation4], %s2198_s18, %s2198_s18, %s2199_s19  }
0x195d   :  { %s2166_s22 = scalar_lea.vmem %s1859_s17, 32  ;;  %p2171_p6 = scmp.lt.s32.totalorder %s1859_s17, %s1859_s17 }
0x195e   :  { %p2167_p5 = scmp.ne.s32.totalorder %s1859_s17, %s2166_s22  ;;  %p2172_p7 = scmp.lt.s32.totalorder %s2166_s22, %s2166_s22 }
0x1960   :  { %p2173_p8 = por %p2172_p7, %p2171_p6 }
0x1962   :  { %p2174_p9 = pnand %p2173_p8, %p2167_p5 }
0x1964   :  { %2177 = shalt.err (!%p2174_p9)
}
0x1965   :  { %1861 = dma.vmem_to_hbm [thread:$0]  %s1859_s17, 32, %s2646_s6, [#allocation6]  }
0x1966   :  { %2186 = dma.done.wait [#allocation4], 256  }
0x1967   :  { %2187 = vsyncadd [#allocation4], 4294967040 }
0x1968   :  { %2188 = dma.done.wait [#allocation6], 32  }
0x1969   :  { %2189 = vsyncadd [#allocation6], 4294967264 }
0x196a   :  { %1868 = vsyncpa [#allocation4], 1 }
0x196b   :  { %1869 = vsyncpa [#allocation6], 1 }

</bundles_post_ra>
